<compile_context>
chip_gen: v5e
topology: v5e:2x2
jax: 0.10.0
libtpu: 0.0.40
codegen_flags: <defaults>
</compile_context>

<pallas_src>
import functools

import jax
import jax.numpy as jnp
import numpy as np
from jax.experimental import pallas as pl
from jax.experimental.pallas import tpu as pltpu

EPS = 1e-5
LANE = 128


def _round_up(x, m):
    return (x + m - 1) // m * m


def _row_tile(m):
    for t in (1024, 512, 256, 128):
        if m % t == 0:
            return t
    return m


# --------------------------------------------------------------------------
# Pass 1: 3x3 conv as 9 shifted GEMMs + per-image channel sum / sum-of-squares
# --------------------------------------------------------------------------
def _conv3x3_stats_kernel(xp_ref, w_ref, y_ref, ssum_ref, ssq_ref, *, H, W, use_bf16):
    # xp_ref  : (1, H+2, W+2, Cp)   spatially padded input tile (one image)
    # w_ref   : (9, Cp, Coutp)      tap-major weights, resident across the grid
    # y_ref   : (1, H*W, Coutp)     conv output tile
    # ssum_ref: (1, 1, Coutp)       per-image channel sum
    # ssq_ref : (1, 1, Coutp)       per-image channel sum of squares
    cp = w_ref.shape[1]
    coutp = w_ref.shape[2]
    acc = jnp.zeros((H * W, coutp), jnp.float32)
    for ky in range(3):
        for kx in range(3):
            patch = xp_ref[0, ky:ky + H, kx:kx + W, :].reshape(H * W, cp)
            wtap = w_ref[3 * ky + kx]
            if use_bf16:
                patch = patch.astype(jnp.bfloat16)
                wtap = wtap.astype(jnp.bfloat16)
            acc = acc + jnp.dot(patch, wtap, preferred_element_type=jnp.float32)
    y_ref[0] = acc
    ssum_ref[0] = jnp.sum(acc, axis=0, keepdims=True)
    ssq_ref[0] = jnp.sum(acc * acc, axis=0, keepdims=True)


def _conv3x3_stats(xp, w, H, W, use_bf16=False):
    """xp: (N, H+2, W+2, Cp) padded NHWC, w: (9, Cp, Coutp)."""
    n = xp.shape[0]
    cp, coutp = w.shape[1], w.shape[2]
    hp, wp = H + 2, W + 2
    kernel = functools.partial(_conv3x3_stats_kernel, H=H, W=W, use_bf16=use_bf16)
    y, ssum, ssq = pl.pallas_call(
        kernel,
        out_shape=(
            jax.ShapeDtypeStruct((n, H * W, coutp), jnp.float32),
            jax.ShapeDtypeStruct((n, 1, coutp), jnp.float32),
            jax.ShapeDtypeStruct((n, 1, coutp), jnp.float32),
        ),
        grid=(n,),
        in_specs=[
            pl.BlockSpec((1, hp, wp, cp), lambda b: (b, 0, 0, 0)),
            pl.BlockSpec((9, cp, coutp), lambda b: (0, 0, 0)),   # resident
        ],
        out_specs=(
            pl.BlockSpec((1, H * W, coutp), lambda b: (b, 0, 0)),
            pl.BlockSpec((1, 1, coutp), lambda b: (b, 0, 0)),
            pl.BlockSpec((1, 1, coutp), lambda b: (b, 0, 0)),
        ),
        compiler_params=pltpu.CompilerParams(dimension_semantics=("parallel",)),
    )(xp, w)
    return y, ssum, ssq


# --------------------------------------------------------------------------
# Pass 2: normalize (+ optional residual) + ReLU, tiled over M = N*H*W rows
# --------------------------------------------------------------------------
def _bn_affine_relu_kernel(y_ref, scale_ref, shift_ref, out_ref):
    out_ref[...] = jnp.maximum(
        y_ref[...] * scale_ref[...] + shift_ref[...], 0.0).astype(out_ref.dtype)


def _bn_affine_res_relu_kernel(y_ref, scale_ref, shift_ref, res_ref, out_ref):
    out_ref[...] = jnp.maximum(
        y_ref[...] * scale_ref[...] + shift_ref[...] + res_ref[...],
        0.0).astype(out_ref.dtype)


def _bn_relu(y2d, scale, shift, res2d=None):
    m, coutp = y2d.shape
    tm = _row_tile(m)
    row_spec = pl.BlockSpec((tm, coutp), lambda i: (i, 0))
    const_spec = pl.BlockSpec((1, coutp), lambda i: (0, 0))   # resident scale/shift
    if res2d is None:
        kernel = _bn_affine_relu_kernel
        operands = (y2d, scale, shift)
        in_specs = [row_spec, const_spec, const_spec]
    else:
        kernel = _bn_affine_res_relu_kernel
        operands = (y2d, scale, shift, res2d)
        in_specs = [row_spec, const_spec, const_spec, row_spec]
    return pl.pallas_call(
        kernel,
        out_shape=jax.ShapeDtypeStruct((m, coutp), jnp.float32),
        grid=(m // tm,),
        in_specs=in_specs,
        out_specs=row_spec,
        compiler_params=pltpu.CompilerParams(dimension_semantics=("parallel",)),
    )(*operands)


# --------------------------------------------------------------------------
# Glue (layout plumbing only; not hot-path compute)
# --------------------------------------------------------------------------
def _pad_channels(x, cp):
    c = x.shape[-1]
    if c == cp:
        return x
    return jnp.pad(x, [(0, 0)] * (x.ndim - 1) + [(0, cp - c)])


def _pad_spatial(x_nhwc):
    return jnp.pad(x_nhwc, ((0, 0), (1, 1), (1, 1), (0, 0)))


def _weights_tap_major(w_oihw, cp, coutp):
    """(Cout, Cin, 3, 3) -> zero-padded (9, Cp, Coutp), tap index = 3*ky+kx."""
    cout, cin = w_oihw.shape[0], w_oihw.shape[1]
    w = jnp.transpose(w_oihw, (2, 3, 1, 0)).reshape(9, cin, cout)
    return jnp.pad(w, ((0, 0), (0, cp - cin), (0, coutp - cout)))


def _bn_scale_shift(ssum, ssq, count, gamma_p, beta_p):
    """Fold batch-statistic BN into per-channel scale/shift: y*scale + shift."""
    total = jnp.sum(ssum, axis=0)          # (1, Coutp)
    total_sq = jnp.sum(ssq, axis=0)        # (1, Coutp)
    mean = total / count
    var = jnp.maximum(total_sq / count - mean * mean, 0.0)
    invstd = jax.lax.rsqrt(var + EPS)
    scale = gamma_p * invstd
    shift = beta_p - mean * scale
    return scale, shift


def init_baseblock_params(key, input_planes, planes):
    """Deterministic synthetic init (kaiming-uniform-like bounds)."""
    k1, k2, k3, k4 = jax.random.split(key, 4)
    fan1 = input_planes * 9
    fan2 = planes * 9
    w1 = jax.random.uniform(k1, (planes, input_planes, 3, 3), jnp.float32,
                            -1.0 / np.sqrt(fan1), 1.0 / np.sqrt(fan1))
    b1 = jax.random.uniform(k2, (planes,), jnp.float32,
                            -1.0 / np.sqrt(fan1), 1.0 / np.sqrt(fan1))
    w2 = jax.random.uniform(k3, (planes, planes, 3, 3), jnp.float32,
                            -1.0 / np.sqrt(fan2), 1.0 / np.sqrt(fan2))
    b2 = jax.random.uniform(k4, (planes,), jnp.float32,
                            -1.0 / np.sqrt(fan2), 1.0 / np.sqrt(fan2))
    return dict(
        w1=w1, b1=b1, g1=jnp.ones((planes,), jnp.float32), be1=jnp.zeros((planes,), jnp.float32),
        w2=w2, b2=b2, g2=jnp.ones((planes,), jnp.float32), be2=jnp.zeros((planes,), jnp.float32),
    )


def baseblock_forward(x_nchw, params, use_bf16_matmul=False):
    """Pallas implementation of Baseblock.forward (stride=1, dim_change=None).

    BN uses batch statistics (the module's default training-mode behaviour).
    The conv biases are intentionally not applied in the kernels: a
    per-channel bias added before batch-statistic BN cancels exactly.
    """
    # TODO(synk): dim_change / stride!=1 downsample path not implemented; this
    # config (identity residual, input_planes == planes) is the one exercised.
    n, c, h, w = x_nchw.shape
    planes = params["w1"].shape[0]
    assert params["w1"].shape[1] == c and planes == c, \
        "identity residual requires input_planes == planes (dim_change=None)"

    cp = _round_up(c, LANE)
    coutp = _round_up(planes, LANE)
    count = jnp.float32(n * h * w)

    x = jnp.transpose(x_nchw, (0, 2, 3, 1)).astype(jnp.float32)   # NHWC
    xc = _pad_channels(x, cp)                                     # (N, H, W, Cp)

    w1 = _weights_tap_major(params["w1"], cp, coutp)
    w2 = _weights_tap_major(params["w2"], coutp, coutp)
    g1 = _pad_channels(params["g1"].reshape(1, planes), coutp)
    g2 = _pad_channels(params["g2"].reshape(1, planes), coutp)
    be1 = _pad_channels(params["be1"].reshape(1, planes), coutp)
    be2 = _pad_channels(params["be2"].reshape(1, planes), coutp)

    # output = relu(bn1(conv1(x)))
    y1, s1, q1 = _conv3x3_stats(_pad_spatial(xc), w1, h, w, use_bf16_matmul)
    scale1, shift1 = _bn_scale_shift(s1, q1, count, g1, be1)
    h1 = _bn_relu(y1.reshape(n * h * w, coutp), scale1, shift1)   # (M, Coutp)

    # output = relu(bn2(conv2(output)) + res)
    h1_img = h1.reshape(n, h, w, coutp)
    y2, s2, q2 = _conv3x3_stats(_pad_spatial(h1_img), w2, h, w, use_bf16_matmul)
    scale2, shift2 = _bn_scale_shift(s2, q2, count, g2, be2)
    res = xc.reshape(n * h * w, cp)                               # identity residual
    out = _bn_relu(y2.reshape(n * h * w, coutp), scale2, shift2, res)

    out = out.reshape(n, h, w, coutp)[..., :planes]
    return jnp.transpose(out, (0, 3, 1, 2))                       # back to NCHW


# ------------------------- pure-JAX reference for validation -------------------------
def _ref_conv(x_nhwc, w_oihw, b):
    w_hwio = jnp.transpose(w_oihw, (2, 3, 1, 0))
    y = jax.lax.conv_general_dilated(
        x_nhwc, w_hwio, window_strides=(1, 1), padding="SAME",
        dimension_numbers=("NHWC", "HWIO", "NHWC"))
    return y + b


def _ref_bn(y, gamma, beta):
    mean = jnp.mean(y, axis=(0, 1, 2), keepdims=True)
    var = jnp.mean(jnp.square(y - mean), axis=(0, 1, 2), keepdims=True)
    return (y - mean) * jax.lax.rsqrt(var + EPS) * gamma + beta


def baseblock_reference(x_nchw, params):
    x = jnp.transpose(x_nchw, (0, 2, 3, 1)).astype(jnp.float32)
    h1 = jax.nn.relu(_ref_bn(_ref_conv(x, params["w1"], params["b1"]),
                             params["g1"], params["be1"]))
    h2 = _ref_bn(_ref_conv(h1, params["w2"], params["b2"]),
                 params["g2"], params["be2"])
    out = jax.nn.relu(h2 + x)
    return jnp.transpose(out, (0, 3, 1, 2))


if __name__ == "__main__":
    key = jax.random.PRNGKey(0)
    kx, kp = jax.random.split(key)

    N, C, H, W = 2, 4, 16, 16          # input_planes = planes = 4, stride = 1
    x = jax.random.normal(kx, (N, C, H, W), jnp.float32)
    params = init_baseblock_params(kp, input_planes=C, planes=C)

    out = jax.block_until_ready(baseblock_forward(x, params))
    ref = jax.block_until_ready(baseblock_reference(x, params))

    assert out.shape == (N, C, H, W)
    np.testing.assert_allclose(np.asarray(out), np.asarray(ref), rtol=1e-4, atol=1e-4)

    print("KERNEL_OK")
</pallas_src>

<mosaic_0001>
module attributes {stable_mosaic.version = 11 : i64} {
  func.func @_conv3x3_stats_kernel(%arg0: i32, %arg1: memref<1x18x18x128xf32, #tpu.memory_space<vmem>>, %arg2: memref<9x128x128xf32, #tpu.memory_space<vmem>>, %arg3: memref<1x256x128xf32, #tpu.memory_space<vmem>>, %arg4: memref<1x1x128xf32, #tpu.memory_space<vmem>>, %arg5: memref<1x1x128xf32, #tpu.memory_space<vmem>>) attributes {dimension_semantics = [#tpu.dimension_semantics<parallel>], iteration_bounds = array<i64: 2>, scalar_prefetch = 0 : i64, scratch_operands = 0 : i64, tpu.core_type = #tpu.core_type<tc>, window_params = [{transform_indices = @transform_0, window_bounds = array<i64: 1, 18, 18, 128>}, {pipeline_mode = #tpu.pipeline_mode<synchronous>, transform_indices = @transform_1, window_bounds = array<i64: 9, 128, 128>}, {transform_indices = @transform_2, window_bounds = array<i64: 1, 256, 128>}, {transform_indices = @transform_3, window_bounds = array<i64: 1, 1, 128>}, {transform_indices = @transform_4, window_bounds = array<i64: 1, 1, 128>}]} {
    %cst = arith.constant 0.000000e+00 : f32
    %0 = vector.broadcast %cst : f32 to vector<256x128xf32>
    %c0 = arith.constant 0 : index
    %c0_0 = arith.constant 0 : index
    %c0_1 = arith.constant 0 : index
    %c0_2 = arith.constant 0 : index
    %1 = vector.load %arg1[%c0, %c0_0, %c0_1, %c0_2] : memref<1x18x18x128xf32, #tpu.memory_space<vmem>>, vector<1x16x16x128xf32>
    %2 = vector.shape_cast %1 : vector<1x16x16x128xf32> to vector<16x16x128xf32>
    %3 = vector.shape_cast %2 : vector<16x16x128xf32> to vector<256x128xf32>
    %c0_3 = arith.constant 0 : index
    %c0_4 = arith.constant 0 : index
    %c0_5 = arith.constant 0 : index
    %4 = vector.load %arg2[%c0_3, %c0_4, %c0_5] : memref<9x128x128xf32, #tpu.memory_space<vmem>>, vector<1x128x128xf32>
    %5 = vector.shape_cast %4 : vector<1x128x128xf32> to vector<128x128xf32>
    %cst_6 = arith.constant dense<0.000000e+00> : vector<256x128xf32>
    %6 = tpu.matmul %3, %5, %cst_6 {dimension_numbers = #tpu.dot_dimension_numbers<[1], [0], [0], [1], [0, 0, 1, 1], [], []>} : vector<256x128xf32>, vector<128x128xf32>, vector<256x128xf32> -> vector<256x128xf32>
    %7 = arith.addf %0, %6 : vector<256x128xf32>
    %c0_7 = arith.constant 0 : index
    %c0_8 = arith.constant 0 : index
    %c1 = arith.constant 1 : index
    %c0_9 = arith.constant 0 : index
    %8 = vector.load %arg1[%c0_7, %c0_8, %c1, %c0_9] : memref<1x18x18x128xf32, #tpu.memory_space<vmem>>, vector<1x16x16x128xf32>
    %9 = vector.shape_cast %8 : vector<1x16x16x128xf32> to vector<16x16x128xf32>
    %10 = vector.shape_cast %9 : vector<16x16x128xf32> to vector<256x128xf32>
    %c1_10 = arith.constant 1 : index
    %c0_11 = arith.constant 0 : index
    %c0_12 = arith.constant 0 : index
    %11 = vector.load %arg2[%c1_10, %c0_11, %c0_12] : memref<9x128x128xf32, #tpu.memory_space<vmem>>, vector<1x128x128xf32>
    %12 = vector.shape_cast %11 : vector<1x128x128xf32> to vector<128x128xf32>
    %cst_13 = arith.constant dense<0.000000e+00> : vector<256x128xf32>
    %13 = tpu.matmul %10, %12, %cst_13 {dimension_numbers = #tpu.dot_dimension_numbers<[1], [0], [0], [1], [0, 0, 1, 1], [], []>} : vector<256x128xf32>, vector<128x128xf32>, vector<256x128xf32> -> vector<256x128xf32>
    %14 = arith.addf %7, %13 : vector<256x128xf32>
    %c0_14 = arith.constant 0 : index
    %c0_15 = arith.constant 0 : index
    %c2 = arith.constant 2 : index
    %c0_16 = arith.constant 0 : index
    %15 = vector.load %arg1[%c0_14, %c0_15, %c2, %c0_16] : memref<1x18x18x128xf32, #tpu.memory_space<vmem>>, vector<1x16x16x128xf32>
    %16 = vector.shape_cast %15 : vector<1x16x16x128xf32> to vector<16x16x128xf32>
    %17 = vector.shape_cast %16 : vector<16x16x128xf32> to vector<256x128xf32>
    %c2_17 = arith.constant 2 : index
    %c0_18 = arith.constant 0 : index
    %c0_19 = arith.constant 0 : index
    %18 = vector.load %arg2[%c2_17, %c0_18, %c0_19] : memref<9x128x128xf32, #tpu.memory_space<vmem>>, vector<1x128x128xf32>
    %19 = vector.shape_cast %18 : vector<1x128x128xf32> to vector<128x128xf32>
    %cst_20 = arith.constant dense<0.000000e+00> : vector<256x128xf32>
    %20 = tpu.matmul %17, %19, %cst_20 {dimension_numbers = #tpu.dot_dimension_numbers<[1], [0], [0], [1], [0, 0, 1, 1], [], []>} : vector<256x128xf32>, vector<128x128xf32>, vector<256x128xf32> -> vector<256x128xf32>
    %21 = arith.addf %14, %20 : vector<256x128xf32>
    %c0_21 = arith.constant 0 : index
    %c1_22 = arith.constant 1 : index
    %c0_23 = arith.constant 0 : index
    %c0_24 = arith.constant 0 : index
    %22 = vector.load %arg1[%c0_21, %c1_22, %c0_23, %c0_24] : memref<1x18x18x128xf32, #tpu.memory_space<vmem>>, vector<1x16x16x128xf32>
    %23 = vector.shape_cast %22 : vector<1x16x16x128xf32> to vector<16x16x128xf32>
    %24 = vector.shape_cast %23 : vector<16x16x128xf32> to vector<256x128xf32>
    %c3 = arith.constant 3 : index
    %c0_25 = arith.constant 0 : index
    %c0_26 = arith.constant 0 : index
    %25 = vector.load %arg2[%c3, %c0_25, %c0_26] : memref<9x128x128xf32, #tpu.memory_space<vmem>>, vector<1x128x128xf32>
    %26 = vector.shape_cast %25 : vector<1x128x128xf32> to vector<128x128xf32>
    %cst_27 = arith.constant dense<0.000000e+00> : vector<256x128xf32>
    %27 = tpu.matmul %24, %26, %cst_27 {dimension_numbers = #tpu.dot_dimension_numbers<[1], [0], [0], [1], [0, 0, 1, 1], [], []>} : vector<256x128xf32>, vector<128x128xf32>, vector<256x128xf32> -> vector<256x128xf32>
    %28 = arith.addf %21, %27 : vector<256x128xf32>
    %c0_28 = arith.constant 0 : index
    %c1_29 = arith.constant 1 : index
    %c1_30 = arith.constant 1 : index
    %c0_31 = arith.constant 0 : index
    %29 = vector.load %arg1[%c0_28, %c1_29, %c1_30, %c0_31] : memref<1x18x18x128xf32, #tpu.memory_space<vmem>>, vector<1x16x16x128xf32>
    %30 = vector.shape_cast %29 : vector<1x16x16x128xf32> to vector<16x16x128xf32>
    %31 = vector.shape_cast %30 : vector<16x16x128xf32> to vector<256x128xf32>
    %c4 = arith.constant 4 : index
    %c0_32 = arith.constant 0 : index
    %c0_33 = arith.constant 0 : index
    %32 = vector.load %arg2[%c4, %c0_32, %c0_33] : memref<9x128x128xf32, #tpu.memory_space<vmem>>, vector<1x128x128xf32>
    %33 = vector.shape_cast %32 : vector<1x128x128xf32> to vector<128x128xf32>
    %cst_34 = arith.constant dense<0.000000e+00> : vector<256x128xf32>
    %34 = tpu.matmul %31, %33, %cst_34 {dimension_numbers = #tpu.dot_dimension_numbers<[1], [0], [0], [1], [0, 0, 1, 1], [], []>} : vector<256x128xf32>, vector<128x128xf32>, vector<256x128xf32> -> vector<256x128xf32>
    %35 = arith.addf %28, %34 : vector<256x128xf32>
    %c0_35 = arith.constant 0 : index
    %c1_36 = arith.constant 1 : index
    %c2_37 = arith.constant 2 : index
    %c0_38 = arith.constant 0 : index
    %36 = vector.load %arg1[%c0_35, %c1_36, %c2_37, %c0_38] : memref<1x18x18x128xf32, #tpu.memory_space<vmem>>, vector<1x16x16x128xf32>
    %37 = vector.shape_cast %36 : vector<1x16x16x128xf32> to vector<16x16x128xf32>
    %38 = vector.shape_cast %37 : vector<16x16x128xf32> to vector<256x128xf32>
    %c5 = arith.constant 5 : index
    %c0_39 = arith.constant 0 : index
    %c0_40 = arith.constant 0 : index
    %39 = vector.load %arg2[%c5, %c0_39, %c0_40] : memref<9x128x128xf32, #tpu.memory_space<vmem>>, vector<1x128x128xf32>
    %40 = vector.shape_cast %39 : vector<1x128x128xf32> to vector<128x128xf32>
    %cst_41 = arith.constant dense<0.000000e+00> : vector<256x128xf32>
    %41 = tpu.matmul %38, %40, %cst_41 {dimension_numbers = #tpu.dot_dimension_numbers<[1], [0], [0], [1], [0, 0, 1, 1], [], []>} : vector<256x128xf32>, vector<128x128xf32>, vector<256x128xf32> -> vector<256x128xf32>
    %42 = arith.addf %35, %41 : vector<256x128xf32>
    %c0_42 = arith.constant 0 : index
    %c2_43 = arith.constant 2 : index
    %c0_44 = arith.constant 0 : index
    %c0_45 = arith.constant 0 : index
    %43 = vector.load %arg1[%c0_42, %c2_43, %c0_44, %c0_45] : memref<1x18x18x128xf32, #tpu.memory_space<vmem>>, vector<1x16x16x128xf32>
    %44 = vector.shape_cast %43 : vector<1x16x16x128xf32> to vector<16x16x128xf32>
    %45 = vector.shape_cast %44 : vector<16x16x128xf32> to vector<256x128xf32>
    %c6 = arith.constant 6 : index
    %c0_46 = arith.constant 0 : index
    %c0_47 = arith.constant 0 : index
    %46 = vector.load %arg2[%c6, %c0_46, %c0_47] : memref<9x128x128xf32, #tpu.memory_space<vmem>>, vector<1x128x128xf32>
    %47 = vector.shape_cast %46 : vector<1x128x128xf32> to vector<128x128xf32>
    %cst_48 = arith.constant dense<0.000000e+00> : vector<256x128xf32>
    %48 = tpu.matmul %45, %47, %cst_48 {dimension_numbers = #tpu.dot_dimension_numbers<[1], [0], [0], [1], [0, 0, 1, 1], [], []>} : vector<256x128xf32>, vector<128x128xf32>, vector<256x128xf32> -> vector<256x128xf32>
    %49 = arith.addf %42, %48 : vector<256x128xf32>
    %c0_49 = arith.constant 0 : index
    %c2_50 = arith.constant 2 : index
    %c1_51 = arith.constant 1 : index
    %c0_52 = arith.constant 0 : index
    %50 = vector.load %arg1[%c0_49, %c2_50, %c1_51, %c0_52] : memref<1x18x18x128xf32, #tpu.memory_space<vmem>>, vector<1x16x16x128xf32>
    %51 = vector.shape_cast %50 : vector<1x16x16x128xf32> to vector<16x16x128xf32>
    %52 = vector.shape_cast %51 : vector<16x16x128xf32> to vector<256x128xf32>
    %c7 = arith.constant 7 : index
    %c0_53 = arith.constant 0 : index
    %c0_54 = arith.constant 0 : index
    %53 = vector.load %arg2[%c7, %c0_53, %c0_54] : memref<9x128x128xf32, #tpu.memory_space<vmem>>, vector<1x128x128xf32>
    %54 = vector.shape_cast %53 : vector<1x128x128xf32> to vector<128x128xf32>
    %cst_55 = arith.constant dense<0.000000e+00> : vector<256x128xf32>
    %55 = tpu.matmul %52, %54, %cst_55 {dimension_numbers = #tpu.dot_dimension_numbers<[1], [0], [0], [1], [0, 0, 1, 1], [], []>} : vector<256x128xf32>, vector<128x128xf32>, vector<256x128xf32> -> vector<256x128xf32>
    %56 = arith.addf %49, %55 : vector<256x128xf32>
    %c0_56 = arith.constant 0 : index
    %c2_57 = arith.constant 2 : index
    %c2_58 = arith.constant 2 : index
    %c0_59 = arith.constant 0 : index
    %57 = vector.load %arg1[%c0_56, %c2_57, %c2_58, %c0_59] : memref<1x18x18x128xf32, #tpu.memory_space<vmem>>, vector<1x16x16x128xf32>
    %58 = vector.shape_cast %57 : vector<1x16x16x128xf32> to vector<16x16x128xf32>
    %59 = vector.shape_cast %58 : vector<16x16x128xf32> to vector<256x128xf32>
    %c8 = arith.constant 8 : index
    %c0_60 = arith.constant 0 : index
    %c0_61 = arith.constant 0 : index
    %60 = vector.load %arg2[%c8, %c0_60, %c0_61] : memref<9x128x128xf32, #tpu.memory_space<vmem>>, vector<1x128x128xf32>
    %61 = vector.shape_cast %60 : vector<1x128x128xf32> to vector<128x128xf32>
    %cst_62 = arith.constant dense<0.000000e+00> : vector<256x128xf32>
    %62 = tpu.matmul %59, %61, %cst_62 {dimension_numbers = #tpu.dot_dimension_numbers<[1], [0], [0], [1], [0, 0, 1, 1], [], []>} : vector<256x128xf32>, vector<128x128xf32>, vector<256x128xf32> -> vector<256x128xf32>
    %63 = arith.addf %56, %62 : vector<256x128xf32>
    %c0_63 = arith.constant 0 : index
    %c0_64 = arith.constant 0 : index
    %c0_65 = arith.constant 0 : index
    %64 = vector.load %arg3[%c0_63, %c0_64, %c0_65] : memref<1x256x128xf32, #tpu.memory_space<vmem>>, vector<1x256x128xf32>
    %65 = vector.shape_cast %64 : vector<1x256x128xf32> to vector<256x128xf32>
    %66 = vector.shape_cast %63 : vector<256x128xf32> to vector<1x256x128xf32>
    tpu.vector_store %arg3[%c0_63, %c0_64, %c0_65], %66 {strides = array<i32>} : memref<1x256x128xf32, #tpu.memory_space<vmem>>, vector<1x256x128xf32>,
    %cst_66 = arith.constant dense<0.000000e+00> : vector<128xf32>
    %67 = vector.multi_reduction <add>, %63, %cst_66 [0] : vector<256x128xf32> to vector<128xf32>
    %68 = vector.shape_cast %67 : vector<128xf32> to vector<1x128xf32>
    %c0_67 = arith.constant 0 : index
    %c0_68 = arith.constant 0 : index
    %c0_69 = arith.constant 0 : index
    %69 = vector.load %arg4[%c0_67, %c0_68, %c0_69] : memref<1x1x128xf32, #tpu.memory_space<vmem>>, vector<1x1x128xf32>
    %70 = vector.shape_cast %69 : vector<1x1x128xf32> to vector<1x128xf32>
    %71 = vector.shape_cast %68 : vector<1x128xf32> to vector<1x1x128xf32>
    tpu.vector_store %arg4[%c0_67, %c0_68, %c0_69], %71 {strides = array<i32>} : memref<1x1x128xf32, #tpu.memory_space<vmem>>, vector<1x1x128xf32>,
    %72 = arith.mulf %63, %63 : vector<256x128xf32>
    %cst_70 = arith.constant dense<0.000000e+00> : vector<128xf32>
    %73 = vector.multi_reduction <add>, %72, %cst_70 [0] : vector<256x128xf32> to vector<128xf32>
    %74 = vector.shape_cast %73 : vector<128xf32> to vector<1x128xf32>
    %c0_71 = arith.constant 0 : index
    %c0_72 = arith.constant 0 : index
    %c0_73 = arith.constant 0 : index
    %75 = vector.load %arg5[%c0_71, %c0_72, %c0_73] : memref<1x1x128xf32, #tpu.memory_space<vmem>>, vector<1x1x128xf32>
    %76 = vector.shape_cast %75 : vector<1x1x128xf32> to vector<1x128xf32>
    %77 = vector.shape_cast %74 : vector<1x128xf32> to vector<1x1x128xf32>
    tpu.vector_store %arg5[%c0_71, %c0_72, %c0_73], %77 {strides = array<i32>} : memref<1x1x128xf32, #tpu.memory_space<vmem>>, vector<1x1x128xf32>,
    return
  }
  func.func @transform_0(%arg0: i32) -> (i32, i32, i32, i32) {
    %c0_i32 = arith.constant 0 : i32
    %c0_i32_0 = arith.constant 0 : i32
    %c0_i32_1 = arith.constant 0 : i32
    %c0_i32_2 = arith.constant 0 : i32
    return %arg0, %c0_i32, %c0_i32_0, %c0_i32_1 : i32, i32, i32, i32
  }
  func.func @transform_1(%arg0: i32) -> (i32, i32, i32) {
    %c0_i32 = arith.constant 0 : i32
    %c0_i32_0 = arith.constant 0 : i32
    %c0_i32_1 = arith.constant 0 : i32
    %c0_i32_2 = arith.constant 0 : i32
    return %c0_i32, %c0_i32_0, %c0_i32_1 : i32, i32, i32
  }
  func.func @transform_2(%arg0: i32) -> (i32, i32, i32) {
    %c0_i32 = arith.constant 0 : i32
    %c0_i32_0 = arith.constant 0 : i32
    %c0_i32_1 = arith.constant 0 : i32
    return %arg0, %c0_i32, %c0_i32_0 : i32, i32, i32
  }
  func.func @transform_3(%arg0: i32) -> (i32, i32, i32) {
    %c0_i32 = arith.constant 0 : i32
    %c0_i32_0 = arith.constant 0 : i32
    %c0_i32_1 = arith.constant 0 : i32
    return %arg0, %c0_i32, %c0_i32_0 : i32, i32, i32
  }
  func.func @transform_4(%arg0: i32) -> (i32, i32, i32) {
    %c0_i32 = arith.constant 0 : i32
    %c0_i32_0 = arith.constant 0 : i32
    %c0_i32_1 = arith.constant 0 : i32
    return %arg0, %c0_i32, %c0_i32_0 : i32, i32, i32
  }
}

</mosaic_0001>

<bundles_post_ra>
// kernel: tpu_custom_call.1
= control target key start
LH: loop header
LB: loop body
LE: loop exit
PB: predicated region body
PF: predicated region fallthrough
CT: control target
= control target key end

     0   :  { %10 = vsyncpa [#allocation3], 0  ;;  %s3880_s0 = inlined_call_operand.vmem [shape: f32[2,18,18,128], index: 0, kind: input, shape index: {}]   ;;  %s3881_s1 = inlined_call_operand.vmem [shape: f32[9,128,128], index: 1, kind: input, shape index: {}]   ;;  %s3882_s2 = inlined_call_operand.hbm [shape: f32[2,256,128], index: 2, kind: output, shape index: {0}]   ;;  %s3883_s3 = inlined_call_operand.hbm [shape: f32[2,1,128], index: 3, kind: output, shape index: {1}]   ;;  %s3884_s4 = inlined_call_operand.hbm [shape: f32[2,1,128], index: 4, kind: output, shape index: {2}]  }
   0x1   :  { %12 = vsyncpa [#allocation3 + $0x1], 0 }
   0x2   :  { %13 = vsyncpa [#allocation5], 0 }
   0x3   :  { %15 = vsyncpa [#allocation5 + $0x1], 0  ;;  %s2783_s15 = smov 0   ;;  %s2785_s16 = smov 0  }
   0x4   :  { %s2787_s17 = smov 0   ;;  %s2789_s18 = smov 0  }
   0x5 LB: > { %s2804_s19 = sadd.s32 4294967295, %s2754_s18   ;;  %s2200_s20 = sadd.s32 4294967294, %s2754_s18   ;;  %s2754_s18 = sphi %s2789_s18, %s3890_s18   ;;  %s2750_s17 = sphi %s2787_s17, %s3889_s17   ;;  %s2746_s16 = sphi %s2785_s16, %s3888_s16   ;;  %s2742_s15 = sphi %s2783_s15, %s3887_s15  }
   0x6   : > { %s2808_s21 = sadd.s32 1, %s2754_s18   ;;  %s75_s22 = sadd.s32 1, %s2750_s17 }
   0x7   : > { %s72_s23 = ssub.s32 %s2754_s18, %s2808_s21  ;;  %p85_p0 = scmp.ne.s32.totalorder %s2750_s17, %s2746_s16 }
   0x8   : > { %p73_p1 = scmp.eq.s32.totalorder %s72_s23, 0  ;;  %p86_p2 = scmp.eq.s32.totalorder %s2804_s19, 1 }
   0x9   : > { %p91_p3 = scmp.ne.s32.totalorder %s2746_s16, %s2742_s15  ;;  %p92_p4 = scmp.eq.s32.totalorder %s2200_s20, 1 }
   0xa   : > { %s2821_s24 = scalar_select %p73_p1, %s2750_s17, %s75_s22  }
   0xb   : > { %p2823_p5 = por %p86_p2, %p85_p0  ;;  %p2827_p6 = por %p92_p4, %p91_p3 }
   0xc   : > { %p2203_p7 = scmp.ge.s32.totalorder %s2754_s18, 1  ;;  %p173_p8 = scmp.lt.s32.totalorder %s2754_s18, 3 }
   0xe   : > { %p174_p9 = pnand %p2203_p7, %p173_p8 }
   0xf   : > { %p207_p10 = scmp.lt.s32.totalorder (!%p174_p9), %s2804_s19, 1  ;;  %s2652_s5 = scalar_lea.hbm (!%p174_p9), %s3882_s2, 512 }
  0x10   : > { %177 = sbr.rel (%p174_p9) target bundleno = 792 (0x318), region = 28 }
  0x15   : > { %v2221_v0 = vld [vmem:[%s3881_s1 + $0xf8] sm:$0xff]  ;;  %v2220_v1 = vld [vmem:[%s3881_s1 + $0xf0] sm:$0xff]  ;;  %v2219_v2 = vld [vmem:[%s3881_s1 + $0xe8] sm:$0xff]  ;;  %s208_s7 = scalar_select %p207_p10, %s2804_s19, 1 }
  0x16   : > { %2532 = vmatpush.msra.mxu1 %v2221_v0  ;;  %2533 = vmatpush.msra.mxu2 %v2221_v0  ;;  %v2218_v3 = vld [vmem:[%s3881_s1 + $0xe0] sm:$0xff]  ;;  %v2217_v4 = vld [vmem:[%s3881_s1 + $0xd8] sm:$0xff]  ;;  %v2216_v5 = vld [vmem:[%s3881_s1 + $0xd0] sm:$0xff] }
  0x17   : > { %2534 = vmatpush.msra.mxu3 %v2221_v0  ;;  %309 = vmatpush.msra.mxu0 %v2221_v0  ;;  %v2215_v6 = vld [vmem:[%s3881_s1 + $0xc8] sm:$0xff]  ;;  %v2214_v7 = vld [vmem:[%s3881_s1 + $0xc0] sm:$0xff]  ;;  %v2213_v8 = vld [vmem:[%s3881_s1 + $0xb8] sm:$0xff]  ;;  %s2580_s12 = smul.u32 432, %s208_s7  ;;  %s3681_s7 = sand.u32 1, %s2746_s16  }
  0x18   : > { %2535 = vmatpush.msra.mxu1 %v2220_v1  ;;  %2536 = vmatpush.msra.mxu2 %v2220_v1  ;;  %v2212_v9 = vld [vmem:[%s3881_s1 + $0xb0] sm:$0xff]  ;;  %v2211_v10 = vld [vmem:[%s3881_s1 + $0xa8] sm:$0xff]  ;;  %v2210_v11 = vld [vmem:[%s3881_s1 + $0xa0] sm:$0xff]  ;;  %s2204_s8 = sshll.u32 %s3681_s7, 8  ;;  %s2036_s22 = scalar_lea.sflag [#allocation3], %s3681_s7 }
  0x19   : > { %2537 = vmatpush.msra.mxu3 %v2220_v1  ;;  %310 = vmatpush.msra.mxu0 %v2220_v1  ;;  %v2209_v12 = vld [vmem:[%s3881_s1 + $0x98] sm:$0xff]  ;;  %v2208_v13 = vld [vmem:[%s3881_s1 + $0x90] sm:$0xff]  ;;  %v2207_v14 = vld [vmem:[%s3881_s1 + $0x88] sm:$0xff]  ;;  %s2883_s29 = scalar_lea.vmem %s3880_s0, %s2580_s12  ;;  %s3689_s9 = scalar_lea.vmem [#allocation2], %s2204_s8 }
  0x1a   : > { %2538 = vmatpush.msra.mxu1 %v2219_v2  ;;  %2539 = vmatpush.msra.mxu2 %v2219_v2  ;;  %v2206_v15 = vld [vmem:[%s3881_s1 + $0x80] sm:$0xff]  ;;  %v2237_v18 = vld [vmem:[%s3881_s1 + $0x178] sm:$0xff]  ;;  %v2236_v22 = vld [vmem:[%s3881_s1 + $0x170] sm:$0xff]  ;;  %s2056_s13 = sshll.u32 %s3689_s9, 4  ;;  %s2057_s13 = int_to_ptr.vmem [resolvable:$true] %s2056_s13 }
  0x1b   : > { %2540 = vmatpush.msra.mxu3 %v2219_v2  ;;  %311 = vmatpush.msra.mxu0 %v2219_v2  ;;  %v2889_v16 = vld [vmem:[%s2883_s29 + $0x61] sm:$0xff]  ;;  %v259_v20 = vld [vmem:[%s3881_s1 + $0x78] sm:$0xff]  ;;  %v258_v23 = vld [vmem:[%s3881_s1 + $0x70] sm:$0xff] }
  0x1c   : > { %2541 = vmatpush.msra.mxu1 %v2218_v3  ;;  %2542 = vmatpush.msra.mxu2 %v2218_v3  ;;  %v2892_v17 = vld [vmem:[%s2883_s29 + $0xc1] sm:$0xff]  ;;  %v2285_v21 = vld [vmem:[%s3881_s1 + $0x1f8] sm:$0xff]  ;;  %v2284_v24 = vld [vmem:[%s3881_s1 + $0x1f0] sm:$0xff] }
  0x1d   : > { %2543 = vmatpush.msra.mxu3 %v2218_v3  ;;  %312 = vmatpush.msra.mxu0 %v2218_v3  ;;  %v284_v19 = vld [vmem:[%s2883_s29 + $0x121] sm:$0xff]  ;;  %v2333_v29 = vld [vmem:[%s3881_s1 + $0x278] sm:$0xff]  ;;  %v2929_v30 = vld [vmem:[%s2883_s29 + $0x69] sm:$0xff] }
  0x1e   : > { %2544 = vmatpush.msra.mxu1 %v2217_v4  ;;  %2545 = vmatpush.msra.mxu2 %v2217_v4  ;;  %v2235_v25 = vld [vmem:[%s3881_s1 + $0x168] sm:$0xff]  ;;  %v2234_v32 = vld [vmem:[%s3881_s1 + $0x160] sm:$0xff]  ;;  %v2332_v35 = vld [vmem:[%s3881_s1 + $0x270] sm:$0xff] }
  0x1f   : > { %2546 = vmatpush.msra.mxu3 %v2217_v4  ;;  %313 = vmatpush.msra.mxu0 %v2217_v4  ;;  %v260_v26 = vld [vmem:[%s2883_s29 + $0x1] sm:$0xff]  ;;  %v2932_v31 = vld [vmem:[%s2883_s29 + $0xc9] sm:$0xff]  ;;  %v2233_v37 = vld [vmem:[%s3881_s1 + $0x158] sm:$0xff] }
  0x20   : > { %2547 = vmatpush.msra.mxu1 %v2216_v5  ;;  %2548 = vmatpush.msra.mxu2 %v2216_v5  ;;  %v257_v27 = vld [vmem:[%s3881_s1 + $0x68] sm:$0xff]  ;;  %v2282_v33 = vld [vmem:[%s3881_s1 + $0x1e0] sm:$0xff]  ;;  %v2281_v38 = vld [vmem:[%s3881_s1 + $0x1d8] sm:$0xff] }
  0x21   : > { %2549 = vmatpush.msra.mxu3 %v2216_v5  ;;  %314 = vmatpush.msra.mxu0 %v2216_v5  ;;  %v2283_v28 = vld [vmem:[%s3881_s1 + $0x1e8] sm:$0xff]  ;;  %v256_v36 = vld [vmem:[%s3881_s1 + $0x60] sm:$0xff]  ;;  %v255_v40 = vld [vmem:[%s3881_s1 + $0x58] sm:$0xff] }
  0x22   : > { %2550 = vmatpush.msra.mxu1 %v2215_v6  ;;  %2551 = vmatpush.msra.mxu2 %v2215_v6  ;;  %v285_v34 = vld [vmem:[%s2883_s29 + $0x129] sm:$0xff]  ;;  %v2330_v44 = vld [vmem:[%s3881_s1 + $0x260] sm:$0xff]  ;;  %v2329_v51 = vld [vmem:[%s3881_s1 + $0x258] sm:$0xff] }
  0x23   : > { %2552 = vmatpush.msra.mxu3 %v2215_v6  ;;  %315 = vmatpush.msra.mxu0 %v2215_v6  ;;  %v2331_v39 = vld [vmem:[%s3881_s1 + $0x268] sm:$0xff]  ;;  %v2232_v41 = vld [vmem:[%s3881_s1 + $0x150] sm:$0xff]  ;;  %v2975_v46 = vld [vmem:[%s2883_s29 + $0x79] sm:$0xff] }
  0x24   : > { %2553 = vmatpush.msra.mxu1 %v2214_v7  ;;  %2554 = vmatpush.msra.mxu2 %v2214_v7  ;;  %v261_v42 = vld [vmem:[%s2883_s29 + $0x9] sm:$0xff]  ;;  %v2978_v47 = vld [vmem:[%s2883_s29 + $0xd9] sm:$0xff]  ;;  %v3023_v62 = vld [vmem:[%s2883_s29 + $0x81] sm:$0xff] }
  0x25   : > { %2555 = vmatpush.msra.mxu3 %v2214_v7  ;;  %316 = vmatpush.msra.mxu0 %v2214_v7  ;;  %v2280_v43 = vld [vmem:[%s3881_s1 + $0x1d0] sm:$0xff]  ;;  %v2231_v48 = vld [vmem:[%s3881_s1 + $0x148] sm:$0xff]  ;;  %v286_v50 = vld [vmem:[%s2883_s29 + $0x139] sm:$0xff] }
  0x26   : > { %2556 = vmatpush.msra.mxu1 %v2213_v8  ;;  %2557 = vmatpush.msra.mxu2 %v2213_v8  ;;  %v254_v45 = vld [vmem:[%s3881_s1 + $0x50] sm:$0xff]  ;;  %v2279_v49 = vld [vmem:[%s3881_s1 + $0x1c8] sm:$0xff]  ;;  %v2230_v53 = vld [vmem:[%s3881_s1 + $0x140] sm:$0xff] }
  0x27   : > { %2558 = vmatpush.msra.mxu3 %v2213_v8  ;;  %317 = vmatpush.msra.mxu0 %v2213_v8  ;;  %v253_v52 = vld [vmem:[%s3881_s1 + $0x48] sm:$0xff]  ;;  %v2278_v54 = vld [vmem:[%s3881_s1 + $0x1c0] sm:$0xff]  ;;  %v2328_v55 = vld [vmem:[%s3881_s1 + $0x250] sm:$0xff] }
  0x28   : > { %2559 = vmatpush.msra.mxu1 %v2212_v9  ;;  %2560 = vmatpush.msra.mxu2 %v2212_v9  ;;  %v252_v56 = vld [vmem:[%s3881_s1 + $0x40] sm:$0xff]  ;;  %v2229_v57 = vld [vmem:[%s3881_s1 + $0x138] sm:$0xff]  ;;  %v2327_v60 = vld [vmem:[%s3881_s1 + $0x248] sm:$0xff] }
  0x29   : > { %2561 = vmatpush.msra.mxu3 %v2212_v9  ;;  %318 = vmatpush.msra.mxu0 %v2212_v9  ;;  %v3011_v58 = vld [vmem:[%s2883_s29 + $0x19] sm:$0xff]  ;;  %v3026_v63 = vld [vmem:[%s2883_s29 + $0xe1] sm:$0xff]  ;;  %v2228_v0 = vld [vmem:[%s3881_s1 + $0x130] sm:$0xff] }
  0x2a   : > { %2562 = vmatpush.msra.mxu1 %v2211_v10  ;;  %2563 = vmatpush.msra.mxu2 %v2211_v10  ;;  %v2277_v59 = vld [vmem:[%s3881_s1 + $0x1b8] sm:$0xff]  ;;  %v2276_v1 = vld [vmem:[%s3881_s1 + $0x1b0] sm:$0xff]  ;;  %v287_v2 = vld [vmem:[%s2883_s29 + $0x141] sm:$0xff] }
  0x2b   : > { %2564 = vmatpush.msra.mxu3 %v2211_v10  ;;  %319 = vmatpush.msra.mxu0 %v2211_v10  ;;  %v251_v61 = vld [vmem:[%s3881_s1 + $0x38] sm:$0xff]  ;;  %v2326_v3 = vld [vmem:[%s3881_s1 + $0x240] sm:$0xff]  ;;  %v250_v4 = vld [vmem:[%s3881_s1 + $0x30] sm:$0xff] }
  0x2c   : > { %2565 = vmatpush.msra.mxu1 %v2210_v11  ;;  %2566 = vmatpush.msra.mxu2 %v2210_v11  ;;  %v2227_v5 = vld [vmem:[%s3881_s1 + $0x128] sm:$0xff]  ;;  %v2325_v7 = vld [vmem:[%s3881_s1 + $0x238] sm:$0xff]  ;;  %v2226_v9 = vld [vmem:[%s3881_s1 + $0x120] sm:$0xff] }
  0x2d   : > { %2567 = vmatpush.msra.mxu3 %v2210_v11  ;;  %320 = vmatpush.msra.mxu0 %v2210_v11  ;;  %v2275_v6 = vld [vmem:[%s3881_s1 + $0x1a8] sm:$0xff]  ;;  %v2274_v11 = vld [vmem:[%s3881_s1 + $0x1a0] sm:$0xff] }
  0x2e   : > { %2568 = vmatpush.msra.mxu1 %v2209_v12  ;;  %2569 = vmatpush.msra.mxu2 %v2209_v12  ;;  %v249_v8 = vld [vmem:[%s3881_s1 + $0x28] sm:$0xff] }
  0x2f   : > { %2570 = vmatpush.msra.mxu3 %v2209_v12  ;;  %321 = vmatpush.msra.mxu0 %v2209_v12  ;;  %v3060_v10 = vld [vmem:[%s2883_s29 + $0x21] sm:$0xff]  ;;  %v2324_v12 = vld [vmem:[%s3881_s1 + $0x230] sm:$0xff] }
  0x30   : > { %2571 = vmatpush.msra.mxu1 %v2208_v13  ;;  %2572 = vmatpush.msra.mxu2 %v2208_v13 }
  0x31   : > { %2573 = vmatpush.msra.mxu3 %v2208_v13  ;;  %322 = vmatpush.msra.mxu0 %v2208_v13  ;;  %v248_v13 = vld [vmem:[%s3881_s1 + $0x20] sm:$0xff] }
  0x32   : > { %2574 = vmatpush.msra.mxu1 %v2207_v14  ;;  %2575 = vmatpush.msra.mxu2 %v2207_v14 }
  0x33   : > { %2576 = vmatpush.msra.mxu3 %v2207_v14  ;;  %323 = vmatpush.msra.mxu0 %v2207_v14  ;;  %v3072_v14 = vld [vmem:[%s2883_s29 + $0x91] sm:$0xff] }
  0x34   : > { %2577 = vmatpush.msra.mxu1 %v2206_v15  ;;  %2578 = vmatpush.msra.mxu2 %v2206_v15 }
  0x35   : > { %349 = vmatmul.f32.vlgmr.msra.gmra.mxu1 %v2889_v16  ;;  %373 = vmatmul.f32.vlgmr.msra.gmra.mxu2 %v2892_v17 }
  0x36   : > { %584 = vmatpush.msrb.mxu2 %v2237_v18  ;;  %2579 = vmatpush.msra.mxu3 %v2206_v15  ;;  %v2225_v18 = vld [vmem:[%s3881_s1 + $0x118] sm:$0xff] }
  0x37   : > { %397 = vmatmul.f32.vlgmr.msra.gmra.mxu3 %v284_v19  ;;  %422 = vmatpush.msrb.mxu1 %v259_v20  ;;  %v2273_v19 = vld [vmem:[%s3881_s1 + $0x198] sm:$0xff] }
  0x38   : > { %779 = vmatpush.msrb.mxu3 %v2285_v21  ;;  %585 = vmatpush.msrb.mxu2 %v2236_v22  ;;  %v288_v20 = vld [vmem:[%s2883_s29 + $0x151] sm:$0xff]  ;;  %v2323_v21 = vld [vmem:[%s3881_s1 + $0x228] sm:$0xff] }
  0x39   : > { %423 = vmatpush.msrb.mxu1 %v258_v23  ;;  %324 = vmatpush.msra.mxu0 %v2206_v15  ;;  %v3075_v15 = vld [vmem:[%s2883_s29 + $0xf1] sm:$0xff] }
  0x3a   : > { %780 = vmatpush.msrb.mxu3 %v2284_v24  ;;  %586 = vmatpush.msrb.mxu2 %v2235_v25  ;;  %v247_v22 = vld [vmem:[%s3881_s1 + $0x18] sm:$0xff]  ;;  %v2224_v23 = vld [vmem:[%s3881_s1 + $0x110] sm:$0xff]  ;;  %v2322_v25 = vld [vmem:[%s3881_s1 + $0x220] sm:$0xff] }
  0x3b   : > { %325 = vmatmul.f32.vlgmr.msra.gmra.mxu0 %v260_v26  ;;  %424 = vmatpush.msrb.mxu1 %v257_v27  ;;  %v2272_v24 = vld [vmem:[%s3881_s1 + $0x190] sm:$0xff]  ;;  %v2223_v27 = vld [vmem:[%s3881_s1 + $0x108] sm:$0xff] }
  0x3c   : > { %781 = vmatpush.msrb.mxu3 %v2283_v28  ;;  %973 = vmatpush.msrb.mxu0 %v2333_v29  ;;  %v246_v26 = vld [vmem:[%s3881_s1 + $0x10] sm:$0xff]  ;;  %v2271_v29 = vld [vmem:[%s3881_s1 + $0x188] sm:$0xff] }
  0x3d   : > { %352 = vmatmul.f32.gmra.mxu1 %v2929_v30  ;;  %376 = vmatmul.f32.gmra.mxu2 %v2932_v31  ;;  %v3109_v28 = vld [vmem:[%s2883_s29 + $0x31] sm:$0xff] }
  0x3e   : > { %587 = vmatpush.msrb.mxu2 %v2234_v32  ;;  %782 = vmatpush.msrb.mxu3 %v2282_v33  ;;  %v2321_v32 = vld [vmem:[%s3881_s1 + $0x218] sm:$0xff]  ;;  %v245_v33 = vld [vmem:[%s3881_s1 + $0x8] sm:$0xff] }
  0x3f   : > { %400 = vmatmul.f32.gmra.mxu3 %v285_v34  ;;  %974 = vmatpush.msrb.mxu0 %v2332_v35  ;;  %v3121_v34 = vld [vmem:[%s2883_s29 + $0x99] sm:$0xff] }
  0x40   : > { %425 = vmatpush.msrb.mxu1 %v256_v36  ;;  %588 = vmatpush.msrb.mxu2 %v2233_v37  ;;  %v3124_v35 = vld [vmem:[%s2883_s29 + $0xf9] sm:$0xff] }
  0x41   : > { %783 = vmatpush.msrb.mxu3 %v2281_v38  ;;  %975 = vmatpush.msrb.mxu0 %v2331_v39  ;;  %v2222_v36 = vld [vmem:[%s3881_s1 + $0x100] sm:$0xff]  ;;  %v2320_v39 = vld [vmem:[%s3881_s1 + $0x210] sm:$0xff] }
  0x42   : > { %426 = vmatpush.msrb.mxu1 %v255_v40  ;;  %589 = vmatpush.msrb.mxu2 %v2232_v41  ;;  %v2270_v37 = vld [vmem:[%s3881_s1 + $0x180] sm:$0xff]  ;;  %v2429_v41 = vld [vmem:[%s3881_s1 + $0x378] sm:$0xff] }
  0x43   : > { %328 = vmatmul.f32.gmra.mxu0 %v261_v42  ;;  %784 = vmatpush.msrb.mxu3 %v2280_v43  ;;  %v289_v38 = vld [vmem:[%s2883_s29 + $0x159] sm:$0xff]  ;;  %v2319_v42 = vld [vmem:[%s3881_s1 + $0x208] sm:$0xff] }
  0x44   : > { %976 = vmatpush.msrb.mxu0 %v2330_v44  ;;  %427 = vmatpush.msrb.mxu1 %v254_v45  ;;  %v244_v40 = vld [vmem:[%s3881_s1] sm:$0xff]  ;;  %v2477_v43 = vld [vmem:[%s3881_s1 + $0x3f8] sm:$0xff] }
  0x45   : > { %355 = vmatmul.f32.gmra.mxu1 %v2975_v46  ;;  %379 = vmatmul.f32.gmra.mxu2 %v2978_v47  ;;  %v2381_v44 = vld [vmem:[%s3881_s1 + $0x2f8] sm:$0xff] }
  0x46   : > { %590 = vmatpush.msrb.mxu2 %v2231_v48  ;;  %785 = vmatpush.msrb.mxu3 %v2279_v49  ;;  %v3155_v45 = vld [vmem:[%s2883_s29 + $0x39] sm:$0xff]  ;;  %v3161_v49 = vld [vmem:[%s2883_s29 + $0xa9] sm:$0xff] }
  0x47   : > { %403 = vmatmul.f32.gmra.mxu3 %v286_v50  ;;  %977 = vmatpush.msrb.mxu0 %v2329_v51  ;;  %v2318_v48 = vld [vmem:[%s3881_s1 + $0x200] sm:$0xff]  ;;  %v3164_v50 = vld [vmem:[%s2883_s29 + $0x109] sm:$0xff]  ;;  %v2525_v51 = vld [vmem:[%s3881_s1 + $0x478] sm:$0xff] }
  0x48   : > { %428 = vmatpush.msrb.mxu1 %v253_v52  ;;  %591 = vmatpush.msrb.mxu2 %v2230_v53  ;;  %v290_v52 = vld [vmem:[%s2883_s29 + $0x169] sm:$0xff] }
  0x49   : > { %786 = vmatpush.msrb.mxu3 %v2278_v54  ;;  %978 = vmatpush.msrb.mxu0 %v2328_v55  ;;  %v2428_v53 = vld [vmem:[%s3881_s1 + $0x370] sm:$0xff] }
  0x4a   : > { %429 = vmatpush.msrb.mxu1 %v252_v56  ;;  %592 = vmatpush.msrb.mxu2 %v2229_v57  ;;  %v2476_v54 = vld [vmem:[%s3881_s1 + $0x3f0] sm:$0xff] }
  0x4b   : > { %331 = vmatmul.f32.gmra.mxu0 %v3011_v58  ;;  %787 = vmatpush.msrb.mxu3 %v2277_v59  ;;  %v2380_v55 = vld [vmem:[%s3881_s1 + $0x2f0] sm:$0xff] }
  0x4c   : > { %979 = vmatpush.msrb.mxu0 %v2327_v60  ;;  %430 = vmatpush.msrb.mxu1 %v251_v61  ;;  %v3183_v56 = vld [vmem:[%s2883_s29 + $0x49] sm:$0xff]  ;;  %v3186_v57 = vld [vmem:[%s2883_s29 + $0xb1] sm:$0xff] }
  0x4d   : > { %358 = vmatmul.f32.gmra.mxu1 %v3023_v62  ;;  %382 = vmatmul.f32.gmra.mxu2 %v3026_v63  ;;  %v3189_v59 = vld [vmem:[%s2883_s29 + $0x111] sm:$0xff] }
  0x4e   : > { %593 = vmatpush.msrb.mxu2 %v2228_v0  ;;  %788 = vmatpush.msrb.mxu3 %v2276_v1  ;;  %v291_v60 = vld [vmem:[%s2883_s29 + $0x171] sm:$0xff]  ;;  %v212_v1 = vld [vmem:[%s2883_s29] sm:$0xff] }
  0x4f   : > { %406 = vmatmul.f32.gmra.mxu3 %v287_v2  ;;  %980 = vmatpush.msrb.mxu0 %v2326_v3  ;;  %v2524_v61 = vld [vmem:[%s3881_s1 + $0x470] sm:$0xff]  ;;  %v535_v2 = vld [vmem:[%s2883_s29 + $0x2] sm:$0xff]  ;;  %v2238_v3 = vld [vmem:[%s2883_s29 + $0x18] sm:$0xff] }
  0x50   : > { %431 = vmatpush.msrb.mxu1 %v250_v4  ;;  %594 = vmatpush.msrb.mxu2 %v2227_v5  ;;  %v3199_v0 = vld [vmem:[%s2883_s29 + $0x51] sm:$0xff]  ;;  %v2427_v4 = vld [vmem:[%s3881_s1 + $0x368] sm:$0xff] }
  0x51   : > { %789 = vmatpush.msrb.mxu3 %v2275_v6  ;;  %981 = vmatpush.msrb.mxu0 %v2325_v7  ;;  %v2475_v5 = vld [vmem:[%s3881_s1 + $0x3e8] sm:$0xff] }
  0x52   : > { %432 = vmatpush.msrb.mxu1 %v249_v8  ;;  %595 = vmatpush.msrb.mxu2 %v2226_v9  ;;  %v2379_v6 = vld [vmem:[%s3881_s1 + $0x2e8] sm:$0xff]  ;;  %v2239_v9 = vld [vmem:[%s2883_s29 + $0x20] sm:$0xff] }
  0x53   : > { %334 = vmatmul.f32.gmra.mxu0 %v3060_v10  ;;  %790 = vmatpush.msrb.mxu3 %v2274_v11  ;;  %v213_v7 = vld [vmem:[%s2883_s29 + $0x8] sm:$0xff] }
  0x54   : > { %982 = vmatpush.msrb.mxu0 %v2324_v12  ;;  %433 = vmatpush.msrb.mxu1 %v248_v13  ;;  %v536_v8 = vld [vmem:[%s2883_s29 + $0xa] sm:$0xff]  ;;  %v537_v12 = vld [vmem:[%s2883_s29 + $0x1a] sm:$0xff] }
  0x55   : > { %361 = vmatmul.f32.gmra.mxu1 %v3072_v14  ;;  %385 = vmatmul.f32.gmra.mxu2 %v3075_v15  ;;  %v2523_v11 = vld [vmem:[%s3881_s1 + $0x468] sm:$0xff]  ;;  %v2240_v13 = vld [vmem:[%s2883_s29 + $0x30] sm:$0xff] }
  0x56   : > { %596 = vmatpush.msrb.mxu2 %v2225_v18  ;;  %791 = vmatpush.msrb.mxu3 %v2273_v19  ;;  %v2474_v18 = vld [vmem:[%s3881_s1 + $0x3e0] sm:$0xff] }
  0x57   : > { %409 = vmatmul.f32.gmra.mxu3 %v288_v20  ;;  %983 = vmatpush.msrb.mxu0 %v2323_v21  ;;  %v2378_v19 = vld [vmem:[%s3881_s1 + $0x2e0] sm:$0xff]  ;;  %v2241_v20 = vld [vmem:[%s2883_s29 + $0x38] sm:$0xff] }
  0x58   : > { %434 = vmatpush.msrb.mxu1 %v247_v22  ;;  %597 = vmatpush.msrb.mxu2 %v2224_v23  ;;  %v2522_v21 = vld [vmem:[%s3881_s1 + $0x460] sm:$0xff]  ;;  %v539_v22 = vld [vmem:[%s2883_s29 + $0x32] sm:$0xff]  ;;  %v2242_v23 = vld [vmem:[%s2883_s29 + $0x48] sm:$0xff] }
  0x59   : > { %792 = vmatpush.msrb.mxu3 %v2272_v24  ;;  %984 = vmatpush.msrb.mxu0 %v2322_v25  ;;  %v2425_v24 = vld [vmem:[%s3881_s1 + $0x358] sm:$0xff] }
  0x5a   : > { %435 = vmatpush.msrb.mxu1 %v246_v26  ;;  %598 = vmatpush.msrb.mxu2 %v2223_v27  ;;  %v2473_v25 = vld [vmem:[%s3881_s1 + $0x3d8] sm:$0xff] }
  0x5b   : > { %337 = vmatmul.f32.gmra.mxu0 %v3109_v28  ;;  %793 = vmatpush.msrb.mxu3 %v2271_v29  ;;  %v2377_v26 = vld [vmem:[%s3881_s1 + $0x2d8] sm:$0xff] }
  0x5c   : > { %985 = vmatpush.msrb.mxu0 %v2321_v32  ;;  %436 = vmatpush.msrb.mxu1 %v245_v33  ;;  %v540_v27 = vld [vmem:[%s2883_s29 + $0x3a] sm:$0xff]  ;;  %v541_v32 = vld [vmem:[%s2883_s29 + $0x4a] sm:$0xff] }
  0x5d   : > { %364 = vmatmul.f32.gmra.mxu1 %v3121_v34  ;;  %388 = vmatmul.f32.gmra.mxu2 %v3124_v35  ;;  %v2521_v29 = vld [vmem:[%s3881_s1 + $0x458] sm:$0xff]  ;;  %v2244_v33 = vld [vmem:[%s2883_s29 + $0x60] sm:$0xff] }
  0x5e   : > { %599 = vmatpush.msrb.mxu2 %v2222_v36  ;;  %794 = vmatpush.msrb.mxu3 %v2270_v37  ;;  %v2424_v36 = vld [vmem:[%s3881_s1 + $0x350] sm:$0xff] }
  0x5f   : > { %412 = vmatmul.f32.gmra.mxu3 %v289_v38  ;;  %986 = vmatpush.msrb.mxu0 %v2320_v39  ;;  %v2472_v37 = vld [vmem:[%s3881_s1 + $0x3d0] sm:$0xff] }
  0x60   : > { %437 = vmatpush.msrb.mxu1 %v244_v40  ;;  %1362 = vmatpush.msra.mxu2 %v2429_v41  ;;  %v2376_v38 = vld [vmem:[%s3881_s1 + $0x2d0] sm:$0xff]  ;;  %v2245_v40 = vld [vmem:[%s2883_s29 + $0x68] sm:$0xff] }
  0x61   : > { %987 = vmatpush.msrb.mxu0 %v2319_v42  ;;  %1556 = vmatpush.msra.mxu3 %v2477_v43  ;;  %v542_v39 = vld [vmem:[%s2883_s29 + $0x52] sm:$0xff]  ;;  %v543_v43 = vld [vmem:[%s2883_s29 + $0x62] sm:$0xff] }
  0x62   : > { %1167 = vmatpush.msra.mxu1 %v2381_v44  ;;  %1363 = vmatpush.msra.mxu2 %v2428_v53  ;;  %v2520_v41 = vld [vmem:[%s3881_s1 + $0x450] sm:$0xff]  ;;  %v2246_v44 = vld [vmem:[%s2883_s29 + $0x78] sm:$0xff] }
  0x63   : > { %340 = vmatmul.f32.gmra.mxu0 %v3155_v45  ;;  %1557 = vmatpush.msra.mxu3 %v2476_v54  ;;  %v544_v54 = vld [vmem:[%s2883_s29 + $0x6a] sm:$0xff] }
  0x64   : > { %988 = vmatpush.msrb.mxu0 %v2318_v48  ;;  %1168 = vmatpush.msra.mxu1 %v2380_v55  ;;  %v2247_v55 = vld [vmem:[%s2883_s29 + $0x80] sm:$0xff] }
  0x65   : > { %367 = vmatmul.f32.gmra.mxu1 %v3161_v49  ;;  %391 = vmatmul.f32.gmra.mxu2 %v3164_v50 }
  0x66   : > { %1750 = vmatpush.msra.mxu0 %v2525_v51  ;;  %1364 = vmatpush.msra.mxu2 %v2427_v4  ;;  %v2470_v4 = vld [vmem:[%s3881_s1 + $0x3c0] sm:$0xff] }
  0x67   : > { %415 = vmatmul.f32.gmra.mxu3 %v290_v52  ;;  %1169 = vmatpush.msra.mxu1 %v2379_v6 }
  0x68   : > { %1751 = vmatpush.msra.mxu0 %v2524_v61  ;;  %1558 = vmatpush.msra.mxu3 %v2475_v5 }
  0x69   : > { %1170 = vmatpush.msra.mxu1 %v2378_v19 }
  0x6a   : > { %1752 = vmatpush.msra.mxu0 %v2523_v11  ;;  %1559 = vmatpush.msra.mxu3 %v2474_v18  ;;  %v2249_v11 = vld [vmem:[%s2883_s29 + $0x98] sm:$0xff] }
  0x6b   : > { %343 = vmatmul.f32.gmra.mxu0 %v3183_v56  ;;  %1171 = vmatpush.msra.mxu1 %v2377_v26  ;;  %v548_v26 = vld [vmem:[%s2883_s29 + $0x9a] sm:$0xff] }
  0x6c   : > { %1753 = vmatpush.msra.mxu0 %v2522_v21  ;;  %1560 = vmatpush.msra.mxu3 %v2473_v25  ;;  %v2469_v21 = vld [vmem:[%s3881_s1 + $0x3b8] sm:$0xff] }
  0x6d   : > { %370 = vmatmul.f32.gmra.mxu1 %v3186_v57  ;;  %394 = vmatmul.f32.gmra.mxu2 %v3189_v59 }
  0x6e   : > { %1754 = vmatpush.msra.mxu0 %v2521_v29  ;;  %1561 = vmatpush.msra.mxu3 %v2472_v37  ;;  %v549_v37 = vld [vmem:[%s2883_s29 + $0xaa] sm:$0xff] }
  0x6f   : > { %418 = vmatmul.f32.gmra.mxu3 %v291_v60  ;;  %1172 = vmatpush.msra.mxu1 %v2376_v38  ;;  %v2420_v38 = vld [vmem:[%s3881_s1 + $0x330] sm:$0xff] }
  0x70   : > { %1755 = vmatpush.msra.mxu0 %v2520_v41 }
  0x73   : > { %346 = vmatmul.f32.gmra.mxu0 %v3199_v0 }
  0x75   : > { %438 = vmatmul.f32.vlgmr.msrb.gmra.mxu1 %v212_v1  ;;  %600 = vmatmul.f32.vlgmr.msrb.gmra.mxu2 %v535_v2  ;;  %v545_v2 = vld [vmem:[%s2883_s29 + $0x7a] sm:$0xff] }
  0x77   : > { %795 = vmatmul.f32.vlgmr.msrb.gmra.mxu3 %v2238_v3 }
  0x7b   : > { %989 = vmatmul.f32.vlgmr.msrb.gmra.mxu0 %v3011_v58  ;;  %v2426_v58 = vld [vmem:[%s3881_s1 + $0x360] sm:$0xff] }
  0x7c   : > { %1365 = vmatpush.msra.mxu2 %v2426_v58 }
  0x7d   : > { %441 = vmatmul.f32.gmra.mxu1 %v213_v7  ;;  %603 = vmatmul.f32.gmra.mxu2 %v536_v8 }
  0x7e   : > { %1366 = vmatpush.msra.mxu2 %v2425_v24 }
  0x7f   : > { %798 = vmatmul.f32.gmra.mxu3 %v2239_v9 }
  0x80   : > { %1367 = vmatpush.msra.mxu2 %v2424_v36 }
  0x83   : > { %992 = vmatmul.f32.gmra.mxu0 %v3060_v10  ;;  %v538_v10 = vld [vmem:[%s2883_s29 + $0x22] sm:$0xff] }
  0x85   : > { %444 = vmatmul.f32.gmra.mxu1 %v2238_v3  ;;  %606 = vmatmul.f32.gmra.mxu2 %v537_v12  ;;  %v2422_v3 = vld [vmem:[%s3881_s1 + $0x340] sm:$0xff] }
  0x86   : > { %v2518_v12 = vld [vmem:[%s3881_s1 + $0x440] sm:$0xff] }
  0x87   : > { %801 = vmatmul.f32.gmra.mxu3 %v2240_v13 }
  0x8b   : > { %995 = vmatmul.f32.gmra.mxu0 %v3109_v28  ;;  %v2243_v28 = vld [vmem:[%s2883_s29 + $0x50] sm:$0xff] }
  0x8d   : > { %447 = vmatmul.f32.gmra.mxu1 %v2239_v9  ;;  %609 = vmatmul.f32.gmra.mxu2 %v538_v10  ;;  %v546_v9 = vld [vmem:[%s2883_s29 + $0x82] sm:$0xff]  ;;  %v547_v10 = vld [vmem:[%s2883_s29 + $0x92] sm:$0xff] }
  0x8f   : > { %804 = vmatmul.f32.gmra.mxu3 %v2241_v20 }
  0x93   : > { %998 = vmatmul.f32.gmra.mxu0 %v3155_v45  ;;  %v2471_v45 = vld [vmem:[%s3881_s1 + $0x3c8] sm:$0xff] }
  0x94   : > { %1562 = vmatpush.msra.mxu3 %v2471_v45  ;;  %v2253_v45 = vld [vmem:[%s2883_s29 + $0xc8] sm:$0xff] }
  0x95   : > { %450 = vmatmul.f32.gmra.mxu1 %v2240_v13  ;;  %612 = vmatmul.f32.gmra.mxu2 %v539_v22 }
  0x96   : > { %1563 = vmatpush.msra.mxu3 %v2470_v4 }
  0x97   : > { %807 = vmatmul.f32.gmra.mxu3 %v2242_v23 }
  0x98   : > { %1564 = vmatpush.msra.mxu3 %v2469_v21 }
  0x9b   : > { %1001 = vmatmul.f32.gmra.mxu0 %v3183_v56  ;;  %v2519_v56 = vld [vmem:[%s3881_s1 + $0x448] sm:$0xff] }
  0x9c   : > { %1756 = vmatpush.msra.mxu0 %v2519_v56 }
  0x9d   : > { %453 = vmatmul.f32.gmra.mxu1 %v2241_v20  ;;  %615 = vmatmul.f32.gmra.mxu2 %v540_v27  ;;  %v2421_v20 = vld [vmem:[%s3881_s1 + $0x338] sm:$0xff]  ;;  %v2251_v27 = vld [vmem:[%s2883_s29 + $0xb0] sm:$0xff] }
  0x9e   : > { %1757 = vmatpush.msra.mxu0 %v2518_v12  ;;  %v2371_v12 = vld [vmem:[%s3881_s1 + $0x2a8] sm:$0xff] }
  0x9f   : > { %810 = vmatmul.f32.gmra.mxu3 %v2243_v28 }
  0xa3   : > { %1004 = vmatmul.f32.gmra.mxu0 %v3199_v0 }
  0xa5   : > { %456 = vmatmul.f32.gmra.mxu1 %v2242_v23  ;;  %618 = vmatmul.f32.gmra.mxu2 %v541_v32 }
  0xa7   : > { %813 = vmatmul.f32.gmra.mxu3 %v2244_v33 }
  0xab   : > { %1007 = vmatmul.f32.gmra.mxu0 %v2889_v16  ;;  %v2423_v16 = vld [vmem:[%s3881_s1 + $0x348] sm:$0xff] }
  0xac   : > { %1368 = vmatpush.msra.mxu2 %v2423_v16  ;;  %v550_v16 = vld [vmem:[%s2883_s29 + $0xb2] sm:$0xff] }
  0xad   : > { %459 = vmatmul.f32.gmra.mxu1 %v2243_v28  ;;  %621 = vmatmul.f32.gmra.mxu2 %v542_v39  ;;  %v2517_v28 = vld [vmem:[%s3881_s1 + $0x438] sm:$0xff]  ;;  %v2468_v39 = vld [vmem:[%s3881_s1 + $0x3b0] sm:$0xff] }
  0xae   : > { %1369 = vmatpush.msra.mxu2 %v2422_v3  ;;  %1758 = vmatpush.msra.mxu0 %v2517_v28  ;;  %v2419_v3 = vld [vmem:[%s3881_s1 + $0x328] sm:$0xff] }
  0xaf   : > { %816 = vmatmul.f32.gmra.mxu3 %v2245_v40 }
  0xb0   : > { %1370 = vmatpush.msra.mxu2 %v2421_v20  ;;  %1565 = vmatpush.msra.mxu3 %v2468_v39  ;;  %v552_v20 = vld [vmem:[%s2883_s29 + $0xca] sm:$0xff] }
  0xb2   : > { %v3275_v42 = vpop.f32.mrf.mxu1  ;;  %1371 = vmatpush.msra.mxu2 %v2420_v38 }
  0xb3   : > { %1010 = vmatmul.f32.gmra.mxu0 %v2929_v30  ;;  %v2375_v30 = vld [vmem:[%s3881_s1 + $0x2c8] sm:$0xff] }
  0xb4   : > { %1173 = vmatpush.msra.mxu1 %v2375_v30  ;;  %v2516_v30 = vld [vmem:[%s3881_s1 + $0x430] sm:$0xff]  ;;  %1372 = vmatpush.msra.mxu2 %v2419_v3 }
  0xb5   : > { %462 = vmatmul.f32.gmra.mxu1 %v2244_v33  ;;  %624 = vmatmul.f32.gmra.mxu2 %v543_v43 }
  0xb6   : > { %1759 = vmatpush.msra.mxu0 %v2516_v30 }
  0xb7   : > { %819 = vmatmul.f32.gmra.mxu3 %v2246_v44 }
  0xb8   : > { %v3286_v48 = vpop.f32.mrf.mxu2  ;;  %v3288_v51 = vpop.f32.mrf.mxu0 }
  0xba   : > { %v3293_v52 = vpop.f32.mrf.mxu1  ;;  %v3295_v53 = vpop.f32.mrf.mxu3 }
  0xbb   : > { %1013 = vmatmul.f32.gmra.mxu0 %v2975_v46  ;;  %v2248_v46 = vld [vmem:[%s2883_s29 + $0x90] sm:$0xff] }
  0xbd   : > { %465 = vmatmul.f32.gmra.mxu1 %v2245_v40  ;;  %627 = vmatmul.f32.gmra.mxu2 %v544_v54 }
  0xbf   : > { %822 = vmatmul.f32.gmra.mxu3 %v2247_v55 }
  0xc0   : > { %v3303_v60 = vpop.f32.mrf.mxu2  ;;  %v3305_v61 = vpop.f32.mrf.mxu0 }
  0xc2   : > { %v3307_v0 = vpop.f32.mrf.mxu1  ;;  %v3309_v1 = vpop.f32.mrf.mxu3 }
  0xc3   : > { %1016 = vmatmul.f32.gmra.mxu0 %v3023_v62  ;;  %v2374_v62 = vld [vmem:[%s3881_s1 + $0x2c0] sm:$0xff] }
  0xc4   : > { %1174 = vmatpush.msra.mxu1 %v2374_v62  ;;  %v2467_v62 = vld [vmem:[%s3881_s1 + $0x3a8] sm:$0xff] }
  0xc5   : > { %468 = vmatmul.f32.gmra.mxu1 %v2246_v44  ;;  %630 = vmatmul.f32.gmra.mxu2 %v545_v2 }
  0xc6   : > { %1566 = vmatpush.msra.mxu3 %v2467_v62 }
  0xc7   : > { %825 = vmatmul.f32.gmra.mxu3 %v2248_v46 }
  0xc8   : > { %v3320_v5 = vpop.f32.mrf.mxu2  ;;  %v3322_v6 = vpop.f32.mrf.mxu0 }
  0xca   : > { %v3327_v7 = vpop.f32.mrf.mxu1  ;;  %v3329_v8 = vpop.f32.mrf.mxu3 }
  0xcb   : > { %1019 = vmatmul.f32.gmra.mxu0 %v3072_v14  ;;  %v2250_v14 = vld [vmem:[%s2883_s29 + $0xa8] sm:$0xff] }
  0xcd   : > { %471 = vmatmul.f32.gmra.mxu1 %v2247_v55  ;;  %633 = vmatmul.f32.gmra.mxu2 %v546_v9 }
  0xcf   : > { %828 = vmatmul.f32.gmra.mxu3 %v2249_v11 }
  0xd0   : > { %v3337_v13 = vpop.f32.mrf.mxu2  ;;  %v3339_v58 = vpop.f32.mrf.mxu0 }
  0xd2   : > { %v3341_v18 = vpop.f32.mrf.mxu1  ;;  %v3343_v19 = vpop.f32.mrf.mxu3 }
  0xd3   : > { %1022 = vmatmul.f32.gmra.mxu0 %v3121_v34  ;;  %v2373_v34 = vld [vmem:[%s3881_s1 + $0x2b8] sm:$0xff] }
  0xd4   : > { %1175 = vmatpush.msra.mxu1 %v2373_v34 }
  0xd5   : > { %474 = vmatmul.f32.gmra.mxu1 %v2248_v46  ;;  %636 = vmatmul.f32.gmra.mxu2 %v547_v10  ;;  %v551_v46 = vld [vmem:[%s2883_s29 + $0xc2] sm:$0xff] }
  0xd7   : > { %831 = vmatmul.f32.gmra.mxu3 %v2250_v14 }
  0xd8   : > { %v3354_v22 = vpop.f32.mrf.mxu2  ;;  %v3356_v23 = vpop.f32.mrf.mxu0 }
  0xda   : > { %v3361_v24 = vpop.f32.mrf.mxu1  ;;  %v3363_v25 = vpop.f32.mrf.mxu3 }
  0xdb   : > { %1025 = vmatmul.f32.gmra.mxu0 %v3161_v49  ;;  %v2252_v49 = vld [vmem:[%s2883_s29 + $0xc0] sm:$0xff] }
  0xdd   : > { %477 = vmatmul.f32.gmra.mxu1 %v2249_v11  ;;  %639 = vmatmul.f32.gmra.mxu2 %v548_v26 }
  0xdf   : > { %834 = vmatmul.f32.gmra.mxu3 %v2251_v27 }
  0xe0   : > { %v3371_v29 = vpop.f32.mrf.mxu2  ;;  %v3373_v32 = vpop.f32.mrf.mxu0 }
  0xe2   : > { %v3375_v33 = vpop.f32.mrf.mxu1  ;;  %v3377_v36 = vpop.f32.mrf.mxu3 }
  0xe3   : > { %1028 = vmatmul.f32.gmra.mxu0 %v3186_v57  ;;  %v2372_v57 = vld [vmem:[%s3881_s1 + $0x2b0] sm:$0xff] }
  0xe4   : > { %1176 = vmatpush.msra.mxu1 %v2372_v57 }
  0xe5   : > { %480 = vmatmul.f32.gmra.mxu1 %v2250_v14  ;;  %642 = vmatmul.f32.gmra.mxu2 %v549_v37 }
  0xe6   : > { %1177 = vmatpush.msra.mxu1 %v2371_v12 }
  0xe7   : > { %837 = vmatmul.f32.gmra.mxu3 %v2252_v49 }
  0xe8   : > { %v3388_v40 = vpop.f32.mrf.mxu2  ;;  %v3390_v41 = vpop.f32.mrf.mxu0 }
  0xea   : > { %v3395_v43 = vpop.f32.mrf.mxu1  ;;  %v3397_v44 = vpop.f32.mrf.mxu3 }
  0xeb   : > { %1031 = vmatmul.f32.gmra.mxu0 %v2892_v17  ;;  %v2254_v17 = vld [vmem:[%s2883_s29 + $0xd8] sm:$0xff] }
  0xed   : > { %483 = vmatmul.f32.gmra.mxu1 %v2251_v27  ;;  %645 = vmatmul.f32.gmra.mxu2 %v550_v16  ;;  %v2515_v27 = vld [vmem:[%s3881_s1 + $0x428] sm:$0xff]  ;;  %v2256_v16 = vld [vmem:[%s2883_s29 + $0xf0] sm:$0xff] }
  0xee   : > { %1760 = vmatpush.msra.mxu0 %v2515_v27 }
  0xef   : > { %840 = vmatmul.f32.gmra.mxu3 %v2253_v45 }
  0xf0   : > { %v3405_v54 = vpop.f32.mrf.mxu2  ;;  %v3407_v55 = vpop.f32.mrf.mxu0 }
  0xf2   : > { %v3409_v56 = vpop.f32.mrf.mxu3  ;;  %v439_v2 = vpop.f32.mrf.mxu1 }
  0xf3   : > { %1034 = vmatmul.f32.gmra.mxu0 %v2932_v31  ;;  %v440_v4 = vadd.f32 %v439_v2, %v3288_v51  ;;  %v2255_v51 = vld [vmem:[%s2883_s29 + $0xe0] sm:$0xff] }
  0xf4   : > { %v2466_v2 = vld [vmem:[%s3881_s1 + $0x3a0] sm:$0xff] }
  0xf5   : > { %486 = vmatmul.f32.gmra.mxu1 %v2252_v49  ;;  %648 = vmatmul.f32.gmra.mxu2 %v551_v46 }
  0xf6   : > { %1567 = vmatpush.msra.mxu3 %v2466_v2 }
  0xf7   : > { %843 = vmatmul.f32.gmra.mxu3 %v2254_v17 }
  0xf8   : > { %v601_v9 = vpop.f32.mrf.mxu2  ;;  %v990_v11 = vpop.f32.mrf.mxu0 }
  0xf9   : > { %v697_v31 = vadd.f32 %v601_v9, %v440_v4  ;;  %v554_v9 = vld [vmem:[%s2883_s29 + $0xe2] sm:$0xff] }
  0xfa   : > { %v442_v10 = vpop.f32.mrf.mxu1  ;;  %v796_v14 = vpop.f32.mrf.mxu3 }
  0xfb   : > { %v892_v21 = vadd.f32 %v796_v14, %v697_v31  ;;  %1037 = vmatmul.f32.gmra.mxu0 %v2978_v47  ;;  %v443_v26 = vadd.f32 %v442_v10, %v3305_v61  ;;  %v553_v47 = vld [vmem:[%s2883_s29 + $0xda] sm:$0xff] }
  0xfc   : > { %v2418_v61 = vld [vmem:[%s3881_s1 + $0x320] sm:$0xff] }
  0xfd   : > { %v3427_v34 = vadd.f32 %v990_v11, %v892_v21  ;;  %489 = vmatmul.f32.gmra.mxu1 %v2253_v45  ;;  %651 = vmatmul.f32.gmra.mxu2 %v552_v20  ;;  %v2514_v10 = vld [vmem:[%s3881_s1 + $0x420] sm:$0xff] }
  0xfe   : > { %1373 = vmatpush.msra.mxu2 %v2418_v61  ;;  %1761 = vmatpush.msra.mxu0 %v2514_v10 }
  0xff   : > { %846 = vmatmul.f32.gmra.mxu3 %v2255_v51 }
 0x100   : > { %v604_v28 = vpop.f32.mrf.mxu2  ;;  %v993_v37 = vpop.f32.mrf.mxu0 }
 0x101   : > { %v698_v49 = vadd.f32 %v604_v28, %v443_v26 }
 0x102   : > { %v445_v38 = vpop.f32.mrf.mxu1  ;;  %v799_v39 = vpop.f32.mrf.mxu3 }
 0x103   : > { %v893_v57 = vadd.f32 %v799_v39, %v698_v49  ;;  %1040 = vmatmul.f32.gmra.mxu0 %v3026_v63  ;;  %v446_v30 = vadd.f32 %v445_v38, %v3322_v6  ;;  %v2257_v6 = vld [vmem:[%s2883_s29 + $0xf8] sm:$0xff] }
 0x104   : > { %v2465_v38 = vld [vmem:[%s3881_s1 + $0x398] sm:$0xff] }
 0x105   : > { %v3436_v45 = vadd.f32 %v993_v37, %v893_v57  ;;  %492 = vmatmul.f32.gmra.mxu1 %v2254_v17  ;;  %654 = vmatmul.f32.gmra.mxu2 %v553_v47  ;;  %v2370_v17 = vld [vmem:[%s3881_s1 + $0x2a0] sm:$0xff]  ;;  %v2258_v37 = vld [vmem:[%s2883_s29 + $0x108] sm:$0xff]  ;;  %v2369_v57 = vld [vmem:[%s3881_s1 + $0x298] sm:$0xff] }
 0x106   : > { %1178 = vmatpush.msra.mxu1 %v2370_v17  ;;  %1568 = vmatpush.msra.mxu3 %v2465_v38 }
 0x107   : > { %849 = vmatmul.f32.gmra.mxu3 %v2256_v16 }
 0x108   : > { %v607_v63 = vpop.f32.mrf.mxu2  ;;  %v996_v46 = vpop.f32.mrf.mxu0  ;;  %1179 = vmatpush.msra.mxu1 %v2369_v57 }
 0x109   : > { %v699_v3 = vadd.f32 %v607_v63, %v446_v30  ;;  %v556_v30 = vld [vmem:[%s2883_s29 + $0xfa] sm:$0xff] }
 0x10a   : > { %v448_v4 = vpop.f32.mrf.mxu1  ;;  %v802_v62 = vpop.f32.mrf.mxu3 }
 0x10b   : > { %v894_v11 = vadd.f32 %v802_v62, %v699_v3  ;;  %1043 = vmatmul.f32.gmra.mxu0 %v3075_v15  ;;  %v449_v12 = vadd.f32 %v448_v4, %v3339_v58  ;;  %v555_v15 = vld [vmem:[%s2883_s29 + $0xf2] sm:$0xff] }
 0x10c   : > { %v2417_v58 = vld [vmem:[%s3881_s1 + $0x318] sm:$0xff] }
 0x10d   : > { %v3451_v31 = vadd.f32 %v996_v46, %v894_v11  ;;  %495 = vmatmul.f32.gmra.mxu1 %v2255_v51  ;;  %657 = vmatmul.f32.gmra.mxu2 %v554_v9  ;;  %v2513_v3 = vld [vmem:[%s3881_s1 + $0x418] sm:$0xff]  ;;  %v557_v11 = vld [vmem:[%s2883_s29 + $0x10a] sm:$0xff] }
 0x10e   : > { %1374 = vmatpush.msra.mxu2 %v2417_v58  ;;  %1762 = vmatpush.msra.mxu0 %v2513_v3  ;;  %v558_v58 = vld [vmem:[%s2883_s29 + $0x112] sm:$0xff] }
 0x10f   : > { %852 = vmatmul.f32.gmra.mxu3 %v2257_v6 }
 0x110   : > { %v610_v14 = vpop.f32.mrf.mxu2  ;;  %v999_v20 = vpop.f32.mrf.mxu0 }
 0x111   : > { %v700_v21 = vadd.f32 %v610_v14, %v449_v12 }
 0x112   : > { %v451_v26 = vpop.f32.mrf.mxu1  ;;  %v805_v27 = vpop.f32.mrf.mxu3 }
 0x113   : > { %v895_v28 = vadd.f32 %v805_v27, %v700_v21  ;;  %1046 = vmatmul.f32.gmra.mxu0 %v3124_v35  ;;  %v452_v49 = vadd.f32 %v451_v26, %v3356_v23  ;;  %v2259_v23 = vld [vmem:[%s2883_s29 + $0x110] sm:$0xff]  ;;  %v2308_v26 = vld [vmem:[%s2883_s29 + $0x121] sm:$0xff] }
 0x115   : > { %v3460_v51 = vadd.f32 %v999_v20, %v895_v28  ;;  %498 = vmatmul.f32.gmra.mxu1 %v2256_v16  ;;  %660 = vmatmul.f32.gmra.mxu2 %v555_v15  ;;  %v2464_v20 = vld [vmem:[%s3881_s1 + $0x390] sm:$0xff] }
 0x116   : > { %1569 = vmatpush.msra.mxu3 %v2464_v20  ;;  %v2368_v15 = vld [vmem:[%s3881_s1 + $0x290] sm:$0xff] }
 0x117   : > { %855 = vmatmul.f32.gmra.mxu3 %v2258_v37  ;;  %1180 = vmatpush.msra.mxu1 %v2368_v15  ;;  %v560_v20 = vld [vmem:[%s2883_s29 + $0x12a] sm:$0xff] }
 0x118   : > { %v613_v35 = vpop.f32.mrf.mxu2  ;;  %v1002_v39 = vpop.f32.mrf.mxu0 }
 0x119   : > { %v701_v47 = vadd.f32 %v613_v35, %v452_v49  ;;  %v2261_v49 = vld [vmem:[%s2883_s29 + $0x128] sm:$0xff] }
 0x11a   : > { %v454_v16 = vpop.f32.mrf.mxu1  ;;  %v808_v61 = vpop.f32.mrf.mxu3 }
 0x11b   : > { %v896_v2 = vadd.f32 %v808_v61, %v701_v47  ;;  %1049 = vmatmul.f32.gmra.mxu0 %v3164_v50  ;;  %v455_v46 = vadd.f32 %v454_v16, %v3373_v32  ;;  %v2416_v32 = vld [vmem:[%s3881_s1 + $0x310] sm:$0xff] }
 0x11c   : > { %1375 = vmatpush.msra.mxu2 %v2416_v32  ;;  %v2309_v16 = vld [vmem:[%s2883_s29 + $0x129] sm:$0xff] }
 0x11d   : > { %v3475_v63 = vadd.f32 %v1002_v39, %v896_v2  ;;  %501 = vmatmul.f32.gmra.mxu1 %v2257_v6  ;;  %663 = vmatmul.f32.gmra.mxu2 %v556_v30  ;;  %v2260_v6 = vld [vmem:[%s2883_s29 + $0x120] sm:$0xff]  ;;  %v2512_v39 = vld [vmem:[%s3881_s1 + $0x410] sm:$0xff] }
 0x11e   : > { %1763 = vmatpush.msra.mxu0 %v2512_v39  ;;  %v561_v39 = vld [vmem:[%s2883_s29 + $0x13a] sm:$0xff] }
 0x11f   : > { %858 = vmatmul.f32.gmra.mxu3 %v2259_v23 }
 0x120   : > { %v616_v17 = vpop.f32.mrf.mxu2  ;;  %v1005_v4 = vpop.f32.mrf.mxu0 }
 0x121   : > { %v702_v62 = vadd.f32 %v616_v17, %v455_v46  ;;  %v559_v46 = vld [vmem:[%s2883_s29 + $0x122] sm:$0xff] }
 0x122   : > { %v457_v9 = vpop.f32.mrf.mxu1  ;;  %v811_v50 = vpop.f32.mrf.mxu3 }
 0x123   : > { %v897_v12 = vadd.f32 %v811_v50, %v702_v62  ;;  %1052 = vmatmul.f32.gmra.mxu0 %v3189_v59  ;;  %v458_v14 = vadd.f32 %v457_v9, %v3390_v41  ;;  %v2463_v62 = vld [vmem:[%s3881_s1 + $0x388] sm:$0xff] }
 0x124   : > { %1570 = vmatpush.msra.mxu3 %v2463_v62  ;;  %v562_v62 = vld [vmem:[%s2883_s29 + $0x142] sm:$0xff] }
 0x125   : > { %v3484_v10 = vadd.f32 %v1005_v4, %v897_v12  ;;  %504 = vmatmul.f32.gmra.mxu1 %v2258_v37  ;;  %666 = vmatmul.f32.gmra.mxu2 %v557_v11  ;;  %v2310_v11 = vld [vmem:[%s2883_s29 + $0x139] sm:$0xff] }
 0x127   : > { %861 = vmatmul.f32.gmra.mxu3 %v2260_v6 }
 0x128   : > { %v619_v59 = vpop.f32.mrf.mxu2  ;;  %v1008_v21 = vpop.f32.mrf.mxu0 }
 0x129   : > { %v703_v27 = vadd.f32 %v619_v59, %v458_v14  ;;  %v2263_v59 = vld [vmem:[%s2883_s29 + $0x140] sm:$0xff] }
 0x12a   : > { %v460_v28 = vpop.f32.mrf.mxu1  ;;  %v814_v37 = vpop.f32.mrf.mxu3 }
 0x12b   : > { %v898_v41 = vadd.f32 %v814_v37, %v703_v27  ;;  %1055 = vmatmul.f32.gmra.mxu0 %v2308_v26  ;;  %v461_v35 = vadd.f32 %v460_v28, %v3407_v55  ;;  %v2415_v55 = vld [vmem:[%s3881_s1 + $0x308] sm:$0xff] }
 0x12c   : > { %1376 = vmatpush.msra.mxu2 %v2415_v55  ;;  %v2511_v27 = vld [vmem:[%s3881_s1 + $0x408] sm:$0xff] }
 0x12d   : > { %v3499_v38 = vadd.f32 %v1008_v21, %v898_v41  ;;  %507 = vmatmul.f32.gmra.mxu1 %v2259_v23  ;;  %669 = vmatmul.f32.gmra.mxu2 %v558_v58  ;;  %v2262_v23 = vld [vmem:[%s2883_s29 + $0x138] sm:$0xff]  ;;  %v2311_v37 = vld [vmem:[%s2883_s29 + $0x141] sm:$0xff] }
 0x12e   : > { %1764 = vmatpush.msra.mxu0 %v2511_v27  ;;  %v563_v27 = vld [vmem:[%s2883_s29 + $0x152] sm:$0xff] }
 0x12f   : > { %864 = vmatmul.f32.gmra.mxu3 %v2261_v49 }
 0x130   : > { %v622_v47 = vpop.f32.mrf.mxu2  ;;  %v1011_v57 = vpop.f32.mrf.mxu0 }
 0x131   : > { %v704_v61 = vadd.f32 %v622_v47, %v461_v35 }
 0x132   : > { %v463_v30 = vpop.f32.mrf.mxu1  ;;  %v817_v2 = vpop.f32.mrf.mxu3 }
 0x133   : > { %v899_v3 = vadd.f32 %v817_v2, %v704_v61  ;;  %1058 = vmatmul.f32.gmra.mxu0 %v2309_v16  ;;  %v464_v4 = vadd.f32 %v463_v30, %v3275_v42  ;;  %v2462_v61 = vld [vmem:[%s3881_s1 + $0x380] sm:$0xff] }
 0x134   : > { %1571 = vmatpush.msra.mxu3 %v2462_v61  ;;  %v2267_v61 = vld [vmem:[%s2883_s29 + $0x170] sm:$0xff] }
 0x135   : > { %v3508_v17 = vadd.f32 %v1011_v57, %v899_v3  ;;  %510 = vmatmul.f32.gmra.mxu1 %v2260_v6  ;;  %672 = vmatmul.f32.gmra.mxu2 %v559_v46  ;;  %v2367_v6 = vld [vmem:[%s3881_s1 + $0x288] sm:$0xff]  ;;  %v2312_v46 = vld [vmem:[%s2883_s29 + $0x151] sm:$0xff] }
 0x136   : > { %1181 = vmatpush.msra.mxu1 %v2367_v6 }
 0x137   : > { %867 = vmatmul.f32.gmra.mxu3 %v2262_v23 }
 0x138   : > { %v625_v9 = vpop.f32.mrf.mxu2  ;;  %v1014_v50 = vpop.f32.mrf.mxu0 }
 0x139   : > { %v705_v12 = vadd.f32 %v625_v9, %v464_v4  ;;  %v2265_v9 = vld [vmem:[%s2883_s29 + $0x158] sm:$0xff] }
 0x13a   : > { %v466_v32 = vpop.f32.mrf.mxu1  ;;  %v820_v14 = vpop.f32.mrf.mxu3 }
 0x13b   : > { %v900_v42 = vadd.f32 %v820_v14, %v705_v12  ;;  %1061 = vmatmul.f32.gmra.mxu0 %v2310_v11  ;;  %v467_v26 = vadd.f32 %v466_v32, %v3293_v52  ;;  %v2414_v52 = vld [vmem:[%s3881_s1 + $0x300] sm:$0xff] }
 0x13c   : > { %1377 = vmatpush.msra.mxu2 %v2414_v52  ;;  %v2510_v12 = vld [vmem:[%s3881_s1 + $0x400] sm:$0xff] }
 0x13d   : > { %v3523_v21 = vadd.f32 %v1014_v50, %v900_v42  ;;  %513 = vmatmul.f32.gmra.mxu1 %v2261_v49  ;;  %675 = vmatmul.f32.gmra.mxu2 %v560_v20  ;;  %v2264_v49 = vld [vmem:[%s2883_s29 + $0x150] sm:$0xff]  ;;  %v2313_v14 = vld [vmem:[%s2883_s29 + $0x159] sm:$0xff] }
 0x13e   : > { %1765 = vmatpush.msra.mxu0 %v2510_v12  ;;  %v564_v52 = vld [vmem:[%s2883_s29 + $0x15a] sm:$0xff] }
 0x13f   : > { %870 = vmatmul.f32.gmra.mxu3 %v2263_v59 }
 0x140   : > { %v628_v15 = vpop.f32.mrf.mxu2  ;;  %v1017_v28 = vpop.f32.mrf.mxu0 }
 0x141   : > { %v706_v58 = vadd.f32 %v628_v15, %v467_v26 }
 0x142   : > { %v469_v41 = vpop.f32.mrf.mxu1  ;;  %v823_v35 = vpop.f32.mrf.mxu3 }
 0x143   : > { %v901_v47 = vadd.f32 %v823_v35, %v706_v58  ;;  %1064 = vmatmul.f32.gmra.mxu0 %v2311_v37  ;;  %v470_v16 = vadd.f32 %v469_v41, %v3307_v0  ;;  %v2314_v41 = vld [vmem:[%s2883_s29 + $0x169] sm:$0xff] }
 0x145   : > { %v3532_v57 = vadd.f32 %v1017_v28, %v901_v47  ;;  %516 = vmatmul.f32.gmra.mxu1 %v2262_v23  ;;  %678 = vmatmul.f32.gmra.mxu2 %v561_v39  ;;  %v2366_v23 = vld [vmem:[%s3881_s1 + $0x280] sm:$0xff] }
 0x146   : > { %1182 = vmatpush.msra.mxu1 %v2366_v23 }
 0x147   : > { %873 = vmatmul.f32.gmra.mxu3 %v2264_v49 }
 0x148   : > { %v631_v30 = vpop.f32.mrf.mxu2  ;;  %v1020_v2 = vpop.f32.mrf.mxu0 }
 0x149   : > { %v707_v3 = vadd.f32 %v631_v30, %v470_v16 }
 0x14a   : > { %v472_v55 = vpop.f32.mrf.mxu1  ;;  %v826_v4 = vpop.f32.mrf.mxu3 }
 0x14b   : > { %v902_v0 = vadd.f32 %v826_v4, %v707_v3  ;;  %1067 = vmatmul.f32.gmra.mxu0 %v2312_v46  ;;  %v473_v11 = vadd.f32 %v472_v55, %v3327_v7  ;;  %v2315_v46 = vld [vmem:[%s2883_s29 + $0x171] sm:$0xff] }
 0x14c   : > { %v565_v4 = vld [vmem:[%s2883_s29 + $0x16a] sm:$0xff] }
 0x14d   : > { %v3547_v50 = vadd.f32 %v1020_v2, %v902_v0  ;;  %519 = vmatmul.f32.gmra.mxu1 %v2263_v59  ;;  %681 = vmatmul.f32.gmra.mxu2 %v562_v62  ;;  %v2266_v59 = vld [vmem:[%s2883_s29 + $0x168] sm:$0xff]  ;;  %v2268_v0 = vld [vmem:[%s2883_s29 + $0x180] sm:$0xff] }
 0x14f   : > { %876 = vmatmul.f32.gmra.mxu3 %v2265_v9 }
 0x150   : > { %v634_v6 = vpop.f32.mrf.mxu2  ;;  %v1023_v32 = vpop.f32.mrf.mxu0 }
 0x151   : > { %v708_v20 = vadd.f32 %v634_v6, %v473_v11  ;;  %v2316_v6 = vld [vmem:[%s2883_s29 + $0x181] sm:$0xff] }
 0x152   : > { %v475_v42 = vpop.f32.mrf.mxu1  ;;  %v829_v26 = vpop.f32.mrf.mxu3 }
 0x153   : > { %v903_v15 = vadd.f32 %v829_v26, %v708_v20  ;;  %1070 = vmatmul.f32.gmra.mxu0 %v2313_v14  ;;  %v476_v28 = vadd.f32 %v475_v42, %v3341_v18  ;;  %v566_v42 = vld [vmem:[%s2883_s29 + $0x172] sm:$0xff] }
 0x155   : > { %v3556_v7 = vadd.f32 %v1023_v32, %v903_v15  ;;  %522 = vmatmul.f32.gmra.mxu1 %v2264_v49  ;;  %684 = vmatmul.f32.gmra.mxu2 %v563_v27  ;;  %v2269_v27 = vld [vmem:[%s2883_s29 + $0x188] sm:$0xff] }
 0x157   : > { %879 = vmatmul.f32.gmra.mxu3 %v2266_v59 }
 0x158   : > { %v637_v37 = vpop.f32.mrf.mxu2  ;;  %v1026_v58 = vpop.f32.mrf.mxu0 }
 0x159   : > { %v709_v35 = vadd.f32 %v637_v37, %v476_v28  ;;  %v2317_v37 = vld [vmem:[%s2883_s29 + $0x189] sm:$0xff] }
 0x15a   : > { %v478_v39 = vpop.f32.mrf.mxu1  ;;  %v832_v47 = vpop.f32.mrf.mxu3 }
 0x15b   : > { %v904_v16 = vadd.f32 %v832_v47, %v709_v35  ;;  %1073 = vmatmul.f32.gmra.mxu0 %v2314_v41  ;;  %v479_v18 = vadd.f32 %v478_v39, %v3361_v24  ;;  %v2334_v39 = vld [vmem:[%s2883_s29 + $0x1a] sm:$0xff]  ;;  %v2382_v47 = vld [vmem:[%s2883_s29 + $0x30] sm:$0xff] }
 0x15d   : > { %v3562_v30 = vadd.f32 %v1026_v58, %v904_v16  ;;  %525 = vmatmul.f32.gmra.mxu1 %v2265_v9  ;;  %687 = vmatmul.f32.gmra.mxu2 %v564_v52  ;;  %v2430_v16 = vld [vmem:[%s2883_s29 + $0x31] sm:$0xff] }
 0x15f   : > { %882 = vmatmul.f32.gmra.mxu3 %v2267_v61 }
 0x160   : > { %v640_v49 = vpop.f32.mrf.mxu2  ;;  %v1029_v2 = vpop.f32.mrf.mxu0 }
 0x161   : > { %v710_v3 = vadd.f32 %v640_v49, %v479_v18 }
 0x162   : > { %v481_v23 = vpop.f32.mrf.mxu1  ;;  %v835_v55 = vpop.f32.mrf.mxu3 }
 0x163   : > { %v905_v62 = vadd.f32 %v835_v55, %v710_v3  ;;  %1076 = vmatmul.f32.gmra.mxu0 %v2315_v46  ;;  %v482_v24 = vadd.f32 %v481_v23, %v3375_v33  ;;  %v2335_v55 = vld [vmem:[%s2883_s29 + $0x22] sm:$0xff] }
 0x165   : > { %v3568_v11 = vadd.f32 %v1029_v2, %v905_v62  ;;  %528 = vmatmul.f32.gmra.mxu1 %v2266_v59  ;;  %690 = vmatmul.f32.gmra.mxu2 %v565_v4  ;;  %v2478_v2 = vld [vmem:[%s2883_s29 + $0x32] sm:$0xff] }
 0x166   : > { %v2383_v4 = vld [vmem:[%s2883_s29 + $0x38] sm:$0xff] }
 0x167   : > { %885 = vmatmul.f32.gmra.mxu3 %v2268_v0  ;;  %v2431_v0 = vld [vmem:[%s2883_s29 + $0x39] sm:$0xff] }
 0x168   : > { %v643_v9 = vpop.f32.mrf.mxu2  ;;  %v1032_v12 = vpop.f32.mrf.mxu0 }
 0x169   : > { %v711_v32 = vadd.f32 %v643_v9, %v482_v24 }
 0x16a   : > { %v484_v14 = vpop.f32.mrf.mxu1  ;;  %v838_v20 = vpop.f32.mrf.mxu3 }
 0x16b   : > { %v906_v26 = vadd.f32 %v838_v20, %v711_v32  ;;  %1079 = vmatmul.f32.gmra.mxu0 %v2316_v6  ;;  %v485_v33 = vadd.f32 %v484_v14, %v3395_v43  ;;  %v2479_v6 = vld [vmem:[%s2883_s29 + $0x3a] sm:$0xff] }
 0x16d   : > { %v3574_v15 = vadd.f32 %v1032_v12, %v906_v26  ;;  %531 = vmatmul.f32.gmra.mxu1 %v2267_v61  ;;  %693 = vmatmul.f32.gmra.mxu2 %v566_v42  ;;  %v2384_v42 = vld [vmem:[%s2883_s29 + $0x48] sm:$0xff] }
 0x16f   : > { %888 = vmatmul.f32.gmra.mxu3 %v2269_v27  ;;  %v2432_v27 = vld [vmem:[%s2883_s29 + $0x49] sm:$0xff] }
 0x170   : > { %v646_v59 = vpop.f32.mrf.mxu2  ;;  %v1035_v28 = vpop.f32.mrf.mxu0 }
 0x171   : > { %v712_v58 = vadd.f32 %v646_v59, %v485_v33 }
 0x172   : > { %v487_v41 = vpop.f32.mrf.mxu1  ;;  %v841_v35 = vpop.f32.mrf.mxu3 }
 0x173   : > { %v907_v52 = vadd.f32 %v841_v35, %v712_v58  ;;  %1082 = vmatmul.f32.gmra.mxu0 %v2317_v37  ;;  %v488_v43 = vadd.f32 %v487_v41, %v3286_v48  ;;  %v2480_v37 = vld [vmem:[%s2883_s29 + $0x4a] sm:$0xff] }
 0x175   : > { %v3581_v61 = vadd.f32 %v1035_v28, %v907_v52  ;;  %1183 = vmatmul.f32.vlgmr.msra.gmra.mxu1 %v2334_v39  ;;  %1378 = vmatmul.f32.vlgmr.msra.gmra.mxu2 %v2382_v47  ;;  %v2385_v39 = vld [vmem:[%s2883_s29 + $0x50] sm:$0xff] }
 0x176   : > { %v2433_v52 = vld [vmem:[%s2883_s29 + $0x51] sm:$0xff] }
 0x177   : > { %1572 = vmatmul.f32.vlgmr.msra.gmra.mxu3 %v2430_v16 }
 0x178   : > { %v649_v18 = vpop.f32.mrf.mxu2  ;;  %v1038_v49 = vpop.f32.mrf.mxu0 }
 0x179   : > { %v713_v46 = vadd.f32 %v649_v18, %v488_v43 }
 0x17a   : > { %v490_v3 = vpop.f32.mrf.mxu1  ;;  %v844_v23 = vpop.f32.mrf.mxu3 }
 0x17b   : > { %v908_v62 = vadd.f32 %v844_v23, %v713_v46  ;;  %1766 = vmatmul.f32.vlgmr.msra.gmra.mxu0 %v2478_v2  ;;  %v491_v48 = vadd.f32 %v490_v3, %v3303_v60  ;;  %v2386_v23 = vld [vmem:[%s2883_s29 + $0x60] sm:$0xff] }
 0x17d   : > { %v3588_v24 = vadd.f32 %v1038_v49, %v908_v62  ;;  %1186 = vmatmul.f32.gmra.mxu1 %v2335_v55  ;;  %1381 = vmatmul.f32.gmra.mxu2 %v2383_v4  ;;  %v2481_v49 = vld [vmem:[%s2883_s29 + $0x52] sm:$0xff]  ;;  %v2434_v4 = vld [vmem:[%s2883_s29 + $0x61] sm:$0xff] }
 0x17f   : > { %1575 = vmatmul.f32.gmra.mxu3 %v2431_v0 }
 0x180   : > { %v652_v9 = vpop.f32.mrf.mxu2  ;;  %v1041_v12 = vpop.f32.mrf.mxu0 }
 0x181   : > { %v714_v32 = vadd.f32 %v652_v9, %v491_v48  ;;  %v2482_v9 = vld [vmem:[%s2883_s29 + $0x62] sm:$0xff] }
 0x182   : > { %v493_v14 = vpop.f32.mrf.mxu1  ;;  %v847_v20 = vpop.f32.mrf.mxu3 }
 0x183   : > { %v909_v26 = vadd.f32 %v847_v20, %v714_v32  ;;  %1769 = vmatmul.f32.gmra.mxu0 %v2479_v6  ;;  %v494_v60 = vadd.f32 %v493_v14, %v3320_v5  ;;  %v2387_v14 = vld [vmem:[%s2883_s29 + $0x68] sm:$0xff] }
 0x185   : > { %v3594_v33 = vadd.f32 %v1041_v12, %v909_v26  ;;  %1189 = vmatmul.f32.gmra.mxu1 %v2478_v2  ;;  %1384 = vmatmul.f32.gmra.mxu2 %v2384_v42  ;;  %v2435_v42 = vld [vmem:[%s2883_s29 + $0x69] sm:$0xff] }
 0x187   : > { %1578 = vmatmul.f32.gmra.mxu3 %v2432_v27 }
 0x188   : > { %v655_v59 = vpop.f32.mrf.mxu2  ;;  %v1044_v28 = vpop.f32.mrf.mxu0 }
 0x189   : > { %v715_v58 = vadd.f32 %v655_v59, %v494_v60  ;;  %v2483_v59 = vld [vmem:[%s2883_s29 + $0x6a] sm:$0xff] }
 0x18a   : > { %v496_v41 = vpop.f32.mrf.mxu1  ;;  %v850_v35 = vpop.f32.mrf.mxu3 }
 0x18b   : > { %v910_v47 = vadd.f32 %v850_v35, %v715_v58  ;;  %1772 = vmatmul.f32.gmra.mxu0 %v2480_v37  ;;  %v497_v5 = vadd.f32 %v496_v41, %v3337_v13  ;;  %v2388_v41 = vld [vmem:[%s2883_s29 + $0x78] sm:$0xff] }
 0x18d   : > { %v3600_v16 = vadd.f32 %v1044_v28, %v910_v47  ;;  %1192 = vmatmul.f32.gmra.mxu1 %v2479_v6  ;;  %1387 = vmatmul.f32.gmra.mxu2 %v2385_v39  ;;  %v2436_v39 = vld [vmem:[%s2883_s29 + $0x79] sm:$0xff] }
 0x18f   : > { %1581 = vmatmul.f32.gmra.mxu3 %v2433_v52 }
 0x190   : > { %v658_v43 = vpop.f32.mrf.mxu2  ;;  %v1047_v18 = vpop.f32.mrf.mxu0 }
 0x191   : > { %v716_v2 = vadd.f32 %v658_v43, %v497_v5  ;;  %v2484_v43 = vld [vmem:[%s2883_s29 + $0x7a] sm:$0xff] }
 0x192   : > { %v499_v46 = vpop.f32.mrf.mxu1  ;;  %v853_v3 = vpop.f32.mrf.mxu3 }
 0x193   : > { %v911_v55 = vadd.f32 %v853_v3, %v716_v2  ;;  %1775 = vmatmul.f32.gmra.mxu0 %v2481_v49  ;;  %v500_v13 = vadd.f32 %v499_v46, %v3354_v22  ;;  %v2389_v46 = vld [vmem:[%s2883_s29 + $0x80] sm:$0xff] }
 0x195   : > { %v3606_v62 = vadd.f32 %v1047_v18, %v911_v55  ;;  %1195 = vmatmul.f32.gmra.mxu1 %v2480_v37  ;;  %1390 = vmatmul.f32.gmra.mxu2 %v2386_v23  ;;  %v2437_v23 = vld [vmem:[%s2883_s29 + $0x81] sm:$0xff] }
 0x197   : > { %1584 = vmatmul.f32.gmra.mxu3 %v2434_v4 }
 0x198   : > { %v661_v0 = vpop.f32.mrf.mxu2  ;;  %v1050_v48 = vpop.f32.mrf.mxu0 }
 0x199   : > { %v717_v12 = vadd.f32 %v661_v0, %v500_v13  ;;  %v2485_v0 = vld [vmem:[%s2883_s29 + $0x82] sm:$0xff] }
 0x19a   : > { %v502_v6 = vpop.f32.mrf.mxu1  ;;  %v856_v32 = vpop.f32.mrf.mxu3 }
 0x19b   : > { %v912_v20 = vadd.f32 %v856_v32, %v717_v12  ;;  %1778 = vmatmul.f32.gmra.mxu0 %v2482_v9  ;;  %v503_v22 = vadd.f32 %v502_v6, %v3371_v29  ;;  %v2390_v6 = vld [vmem:[%s2883_s29 + $0x90] sm:$0xff] }
 0x19d   : > { %v3612_v26 = vadd.f32 %v1050_v48, %v912_v20  ;;  %1198 = vmatmul.f32.gmra.mxu1 %v2481_v49  ;;  %1393 = vmatmul.f32.gmra.mxu2 %v2387_v14  ;;  %v2438_v14 = vld [vmem:[%s2883_s29 + $0x91] sm:$0xff] }
 0x19f   : > { %1587 = vmatmul.f32.gmra.mxu3 %v2435_v42 }
 0x1a0   : > { %v664_v27 = vpop.f32.mrf.mxu2  ;;  %v1053_v60 = vpop.f32.mrf.mxu0 }
 0x1a1   : > { %v718_v28 = vadd.f32 %v664_v27, %v503_v22  ;;  %v2486_v27 = vld [vmem:[%s2883_s29 + $0x92] sm:$0xff] }
 0x1a2   : > { %v505_v37 = vpop.f32.mrf.mxu1  ;;  %v859_v58 = vpop.f32.mrf.mxu3 }
 0x1a3   : > { %v913_v35 = vadd.f32 %v859_v58, %v718_v28  ;;  %1781 = vmatmul.f32.gmra.mxu0 %v2483_v59  ;;  %v506_v29 = vadd.f32 %v505_v37, %v3388_v40  ;;  %v2391_v37 = vld [vmem:[%s2883_s29 + $0x98] sm:$0xff] }
 0x1a5   : > { %v3618_v47 = vadd.f32 %v1053_v60, %v913_v35  ;;  %1201 = vmatmul.f32.gmra.mxu1 %v2482_v9  ;;  %1396 = vmatmul.f32.gmra.mxu2 %v2388_v41  ;;  %v2439_v41 = vld [vmem:[%s2883_s29 + $0x99] sm:$0xff] }
 0x1a7   : > { %1590 = vmatmul.f32.gmra.mxu3 %v2436_v39 }
 0x1a8   : > { %v667_v52 = vpop.f32.mrf.mxu2  ;;  %v1056_v5 = vpop.f32.mrf.mxu0 }
 0x1a9   : > { %v719_v18 = vadd.f32 %v667_v52, %v506_v29  ;;  %v2487_v52 = vld [vmem:[%s2883_s29 + $0x9a] sm:$0xff] }
 0x1aa   : > { %v508_v49 = vpop.f32.mrf.mxu1  ;;  %v862_v2 = vpop.f32.mrf.mxu3 }
 0x1ab   : > { %v914_v3 = vadd.f32 %v862_v2, %v719_v18  ;;  %1784 = vmatmul.f32.gmra.mxu0 %v2484_v43  ;;  %v509_v40 = vadd.f32 %v508_v49, %v3405_v54  ;;  %v2392_v49 = vld [vmem:[%s2883_s29 + $0xa8] sm:$0xff] }
 0x1ad   : > { %v3624_v55 = vadd.f32 %v1056_v5, %v914_v3  ;;  %1204 = vmatmul.f32.gmra.mxu1 %v2483_v59  ;;  %1399 = vmatmul.f32.gmra.mxu2 %v2389_v46  ;;  %v2440_v46 = vld [vmem:[%s2883_s29 + $0xa9] sm:$0xff] }
 0x1af   : > { %1593 = vmatmul.f32.gmra.mxu3 %v2437_v23 }
 0x1b0   : > { %v670_v4 = vpop.f32.mrf.mxu2  ;;  %v1059_v13 = vpop.f32.mrf.mxu0 }
 0x1b1   : > { %v720_v48 = vadd.f32 %v670_v4, %v509_v40  ;;  %v2488_v4 = vld [vmem:[%s2883_s29 + $0xaa] sm:$0xff] }
 0x1b2   : > { %v511_v9 = vpop.f32.mrf.mxu1  ;;  %v865_v12 = vpop.f32.mrf.mxu3 }
 0x1b3   : > { %v915_v32 = vadd.f32 %v865_v12, %v720_v48  ;;  %1787 = vmatmul.f32.gmra.mxu0 %v2485_v0  ;;  %v512_v54 = vadd.f32 %v511_v9, %v3295_v53  ;;  %v2393_v9 = vld [vmem:[%s2883_s29 + $0xb0] sm:$0xff] }
 0x1b5   : > { %v3630_v20 = vadd.f32 %v1059_v13, %v915_v32  ;;  %1207 = vmatmul.f32.gmra.mxu1 %v2484_v43  ;;  %1402 = vmatmul.f32.gmra.mxu2 %v2390_v6  ;;  %v2441_v6 = vld [vmem:[%s2883_s29 + $0xb1] sm:$0xff] }
 0x1b7   : > { %1596 = vmatmul.f32.gmra.mxu3 %v2438_v14 }
 0x1b8   : > { %v673_v42 = vpop.f32.mrf.mxu2  ;;  %v1062_v22 = vpop.f32.mrf.mxu0 }
 0x1b9   : > { %v721_v60 = vadd.f32 %v673_v42, %v512_v54  ;;  %v2489_v42 = vld [vmem:[%s2883_s29 + $0xb2] sm:$0xff] }
 0x1ba   : > { %v514_v59 = vpop.f32.mrf.mxu1  ;;  %v868_v28 = vpop.f32.mrf.mxu3 }
 0x1bb   : > { %v916_v58 = vadd.f32 %v868_v28, %v721_v60  ;;  %1790 = vmatmul.f32.gmra.mxu0 %v2486_v27  ;;  %v515_v53 = vadd.f32 %v514_v59, %v3309_v1  ;;  %v2394_v59 = vld [vmem:[%s2883_s29 + $0xc0] sm:$0xff] }
 0x1bd   : > { %v3636_v35 = vadd.f32 %v1062_v22, %v916_v58  ;;  %1210 = vmatmul.f32.gmra.mxu1 %v2485_v0  ;;  %1405 = vmatmul.f32.gmra.mxu2 %v2391_v37  ;;  %v2442_v37 = vld [vmem:[%s2883_s29 + $0xc1] sm:$0xff] }
 0x1bf   : > { %1599 = vmatmul.f32.gmra.mxu3 %v2439_v41 }
 0x1c0   : > { %v676_v39 = vpop.f32.mrf.mxu2  ;;  %v1065_v29 = vpop.f32.mrf.mxu0 }
 0x1c1   : > { %v722_v5 = vadd.f32 %v676_v39, %v515_v53  ;;  %v2490_v39 = vld [vmem:[%s2883_s29 + $0xc2] sm:$0xff] }
 0x1c2   : > { %v517_v43 = vpop.f32.mrf.mxu1  ;;  %v871_v18 = vpop.f32.mrf.mxu3 }
 0x1c3   : > { %v917_v2 = vadd.f32 %v871_v18, %v722_v5  ;;  %1793 = vmatmul.f32.gmra.mxu0 %v2487_v52  ;;  %v518_v1 = vadd.f32 %v517_v43, %v3329_v8  ;;  %v2395_v43 = vld [vmem:[%s2883_s29 + $0xc8] sm:$0xff] }
 0x1c5   : > { %v3642_v3 = vadd.f32 %v1065_v29, %v917_v2  ;;  %1213 = vmatmul.f32.gmra.mxu1 %v2486_v27  ;;  %1408 = vmatmul.f32.gmra.mxu2 %v2392_v49  ;;  %v2443_v49 = vld [vmem:[%s2883_s29 + $0xc9] sm:$0xff] }
 0x1c7   : > { %1602 = vmatmul.f32.gmra.mxu3 %v2440_v46 }
 0x1c8   : > { %v679_v23 = vpop.f32.mrf.mxu2  ;;  %v1068_v40 = vpop.f32.mrf.mxu0 }
 0x1c9   : > { %v723_v13 = vadd.f32 %v679_v23, %v518_v1  ;;  %v2491_v23 = vld [vmem:[%s2883_s29 + $0xca] sm:$0xff] }
 0x1ca   : > { %v520_v0 = vpop.f32.mrf.mxu1  ;;  %v874_v48 = vpop.f32.mrf.mxu3 }
 0x1cb   : > { %v918_v12 = vadd.f32 %v874_v48, %v723_v13  ;;  %1796 = vmatmul.f32.gmra.mxu0 %v2488_v4  ;;  %v521_v8 = vadd.f32 %v520_v0, %v3343_v19  ;;  %v2396_v0 = vld [vmem:[%s2883_s29 + $0xd8] sm:$0xff] }
 0x1cd   : > { %v3648_v32 = vadd.f32 %v1068_v40, %v918_v12  ;;  %1216 = vmatmul.f32.gmra.mxu1 %v2487_v52  ;;  %1411 = vmatmul.f32.gmra.mxu2 %v2393_v9  ;;  %v2444_v9 = vld [vmem:[%s2883_s29 + $0xd9] sm:$0xff] }
 0x1cf   : > { %1605 = vmatmul.f32.gmra.mxu3 %v2441_v6 }
 0x1d0   : > { %v682_v14 = vpop.f32.mrf.mxu2  ;;  %v1071_v54 = vpop.f32.mrf.mxu0 }
 0x1d1   : > { %v724_v22 = vadd.f32 %v682_v14, %v521_v8  ;;  %v2492_v14 = vld [vmem:[%s2883_s29 + $0xda] sm:$0xff] }
 0x1d2   : > { %v523_v27 = vpop.f32.mrf.mxu1  ;;  %v877_v60 = vpop.f32.mrf.mxu3 }
 0x1d3   : > { %v919_v28 = vadd.f32 %v877_v60, %v724_v22  ;;  %1799 = vmatmul.f32.gmra.mxu0 %v2489_v42  ;;  %v524_v19 = vadd.f32 %v523_v27, %v3363_v25  ;;  %v2397_v27 = vld [vmem:[%s2883_s29 + $0xe0] sm:$0xff] }
 0x1d5   : > { %v3654_v58 = vadd.f32 %v1071_v54, %v919_v28  ;;  %1219 = vmatmul.f32.gmra.mxu1 %v2488_v4  ;;  %1414 = vmatmul.f32.gmra.mxu2 %v2394_v59  ;;  %v2445_v59 = vld [vmem:[%s2883_s29 + $0xe1] sm:$0xff] }
 0x1d7   : > { %1608 = vmatmul.f32.gmra.mxu3 %v2442_v37 }
 0x1d8   : > { %v685_v41 = vpop.f32.mrf.mxu2  ;;  %v1074_v53 = vpop.f32.mrf.mxu0 }
 0x1d9   : > { %v725_v29 = vadd.f32 %v685_v41, %v524_v19  ;;  %v2493_v41 = vld [vmem:[%s2883_s29 + $0xe2] sm:$0xff] }
 0x1da   : > { %v526_v52 = vpop.f32.mrf.mxu1  ;;  %v880_v5 = vpop.f32.mrf.mxu3 }
 0x1db   : > { %v920_v18 = vadd.f32 %v880_v5, %v725_v29  ;;  %1802 = vmatmul.f32.gmra.mxu0 %v2490_v39  ;;  %v527_v25 = vadd.f32 %v526_v52, %v3377_v36  ;;  %v2398_v52 = vld [vmem:[%s2883_s29 + $0xf0] sm:$0xff] }
 0x1dd   : > { %v3660_v2 = vadd.f32 %v1074_v53, %v920_v18  ;;  %1222 = vmatmul.f32.gmra.mxu1 %v2489_v42  ;;  %1417 = vmatmul.f32.gmra.mxu2 %v2395_v43  ;;  %v2446_v43 = vld [vmem:[%s2883_s29 + $0xf1] sm:$0xff] }
 0x1df   : > { %1611 = vmatmul.f32.gmra.mxu3 %v2443_v49 }
 0x1e0   : > { %v688_v46 = vpop.f32.mrf.mxu2  ;;  %v1077_v1 = vpop.f32.mrf.mxu0 }
 0x1e1   : > { %v726_v40 = vadd.f32 %v688_v46, %v527_v25  ;;  %v2494_v46 = vld [vmem:[%s2883_s29 + $0xf2] sm:$0xff] }
 0x1e2   : > { %v529_v4 = vpop.f32.mrf.mxu1  ;;  %v883_v13 = vpop.f32.mrf.mxu3 }
 0x1e3   : > { %v921_v48 = vadd.f32 %v883_v13, %v726_v40  ;;  %1805 = vmatmul.f32.gmra.mxu0 %v2491_v23  ;;  %v530_v36 = vadd.f32 %v529_v4, %v3397_v44  ;;  %v2399_v4 = vld [vmem:[%s2883_s29 + $0xf8] sm:$0xff] }
 0x1e5   : > { %v3666_v12 = vadd.f32 %v1077_v1, %v921_v48  ;;  %1225 = vmatmul.f32.gmra.mxu1 %v2490_v39  ;;  %1420 = vmatmul.f32.gmra.mxu2 %v2396_v0  ;;  %v2447_v0 = vld [vmem:[%s2883_s29 + $0xf9] sm:$0xff] }
 0x1e7   : > { %1614 = vmatmul.f32.gmra.mxu3 %v2444_v9 }
 0x1e8   : > { %v691_v6 = vpop.f32.mrf.mxu2  ;;  %v1080_v8 = vpop.f32.mrf.mxu0 }
 0x1e9   : > { %v727_v54 = vadd.f32 %v691_v6, %v530_v36  ;;  %v2495_v6 = vld [vmem:[%s2883_s29 + $0xfa] sm:$0xff] }
 0x1ea   : > { %v532_v42 = vpop.f32.mrf.mxu1  ;;  %v886_v22 = vpop.f32.mrf.mxu3 }
 0x1eb   : > { %v922_v60 = vadd.f32 %v886_v22, %v727_v54  ;;  %1808 = vmatmul.f32.gmra.mxu0 %v2492_v14  ;;  %v533_v44 = vadd.f32 %v532_v42, %v3409_v56  ;;  %v2400_v42 = vld [vmem:[%s2883_s29 + $0x108] sm:$0xff] }
 0x1ed   : > { %v3672_v28 = vadd.f32 %v1080_v8, %v922_v60  ;;  %1228 = vmatmul.f32.gmra.mxu1 %v2491_v23  ;;  %1423 = vmatmul.f32.gmra.mxu2 %v2397_v27  ;;  %v2448_v27 = vld [vmem:[%s2883_s29 + $0x109] sm:$0xff] }
 0x1ef   : > { %1617 = vmatmul.f32.gmra.mxu3 %v2445_v59 }
 0x1f0   : > { %v694_v37 = vpop.f32.mrf.mxu2  ;;  %v1083_v19 = vpop.f32.mrf.mxu0 }
 0x1f1   : > { %v728_v53 = vadd.f32 %v694_v37, %v533_v44 }
 0x1f2   : > { %v889_v39 = vpop.f32.mrf.mxu3  ;;  %v1184_v29 = vpop.f32.mrf.mxu1 }
 0x1f3   : > { %v923_v5 = vadd.f32 %v889_v39, %v728_v53  ;;  %1811 = vmatmul.f32.gmra.mxu0 %v2493_v41  ;;  %v1280_v56 = vadd.f32 %v1184_v29, %v3427_v34  ;;  %v2496_v53 = vld [vmem:[%s2883_s29 + $0x10a] sm:$0xff] }
 0x1f5   : > { %v3678_v18 = vadd.f32 %v1083_v19, %v923_v5  ;;  %1231 = vmatmul.f32.gmra.mxu1 %v2492_v14  ;;  %1426 = vmatmul.f32.gmra.mxu2 %v2398_v52 }
 0x1f7   : > { %1620 = vmatmul.f32.gmra.mxu3 %v2446_v43  ;;  %v2401_v43 = vld [vmem:[%s2883_s29 + $0x110] sm:$0xff] }
 0x1f8   : > { %v1379_v49 = vpop.f32.mrf.mxu2  ;;  %v1767_v25 = vpop.f32.mrf.mxu0 }
 0x1f9   : > { %v1475_v1 = vadd.f32 %v1379_v49, %v1280_v56  ;;  %v2449_v49 = vld [vmem:[%s2883_s29 + $0x111] sm:$0xff] }
 0x1fa   : > { %v1187_v23 = vpop.f32.mrf.mxu1  ;;  %v1573_v40 = vpop.f32.mrf.mxu3 }
 0x1fb   : > { %v1669_v13 = vadd.f32 %v1573_v40, %v1475_v1  ;;  %1814 = vmatmul.f32.gmra.mxu0 %v2494_v46  ;;  %v1281_v34 = vadd.f32 %v1187_v23, %v3436_v45 }
 0x1fd   : > { %v1863_v48 = vadd.f32 %v1767_v25, %v1669_v13  ;;  %1234 = vmatmul.f32.gmra.mxu1 %v2493_v41  ;;  %1429 = vmatmul.f32.gmra.mxu2 %v2399_v4  ;;  %v2497_v4 = vld [vmem:[%s2883_s29 + $0x112] sm:$0xff] }
 0x1ff   : > { %1895 = vst [vmem:[%s3689_s9] sm:$0xff] %v1863_v48  ;;  %1623 = vmatmul.f32.gmra.mxu3 %v2447_v0  ;;  %v1965_v45 = vmul.f32 %v1863_v48, %v1863_v48 }
 0x200   : > { %v1382_v9 = vpop.f32.mrf.mxu2  ;;  %v1770_v36 = vpop.f32.mrf.mxu0 }
 0x201   : > { %v1476_v8 = vadd.f32 %v1382_v9, %v1281_v34  ;;  %v2402_v9 = vld [vmem:[%s2883_s29 + $0x120] sm:$0xff] }
 0x202   : > { %v1190_v14 = vpop.f32.mrf.mxu1  ;;  %v1576_v54 = vpop.f32.mrf.mxu3 }
 0x203   : > { %v1670_v22 = vadd.f32 %v1576_v54, %v1476_v8  ;;  %1817 = vmatmul.f32.gmra.mxu0 %v2495_v6  ;;  %v1282_v59 = vadd.f32 %v1190_v14, %v3451_v31 }
 0x205   : > { %v1864_v60 = vadd.f32 %v1770_v36, %v1670_v22  ;;  %1237 = vmatmul.f32.gmra.mxu1 %v2494_v46  ;;  %1432 = vmatmul.f32.gmra.mxu2 %v2400_v42 }
 0x207   : > { %1896 = vst [vmem:[%s3689_s9 + $0x8] sm:$0xff] %v1864_v60  ;;  %v1927_v44 = vadd.f32 %v1864_v60, %v1863_v48  ;;  %v1966_v37 = vmul.f32 %v1864_v60, %v1864_v60  ;;  %1626 = vmatmul.f32.gmra.mxu3 %v2448_v27  ;;  %v2498_v27 = vld [vmem:[%s2883_s29 + $0x122] sm:$0xff] }
 0x208   : > { %v1385_v19 = vpop.f32.mrf.mxu2  ;;  %v1773_v41 = vpop.f32.mrf.mxu0 }
 0x209   : > { %v1997_v39 = vadd.f32 %v1966_v37, %v1965_v45  ;;  %v1477_v29 = vadd.f32 %v1385_v19, %v1282_v59  ;;  %v2403_v37 = vld [vmem:[%s2883_s29 + $0x128] sm:$0xff] }
 0x20a   : > { %v1193_v52 = vpop.f32.mrf.mxu1  ;;  %v1579_v5 = vpop.f32.mrf.mxu3 }
 0x20b   : > { %v1671_v56 = vadd.f32 %v1579_v5, %v1477_v29  ;;  %1820 = vmatmul.f32.gmra.mxu0 %v2496_v53  ;;  %v1283_v31 = vadd.f32 %v1193_v52, %v3460_v51 }
 0x20d   : > { %v1865_v25 = vadd.f32 %v1773_v41, %v1671_v56  ;;  %1240 = vmatmul.f32.gmra.mxu1 %v2495_v6  ;;  %1435 = vmatmul.f32.gmra.mxu2 %v2401_v43  ;;  %v2450_v6 = vld [vmem:[%s2883_s29 + $0x121] sm:$0xff]  ;;  %v2451_v41 = vld [vmem:[%s2883_s29 + $0x129] sm:$0xff] }
 0x20e   : > { %v2499_v43 = vld [vmem:[%s2883_s29 + $0x12a] sm:$0xff] }
 0x20f   : > { %1897 = vst [vmem:[%s3689_s9 + $0x10] sm:$0xff] %v1865_v25  ;;  %v1928_v46 = vadd.f32 %v1927_v44, %v1865_v25  ;;  %v1967_v1 = vmul.f32 %v1865_v25, %v1865_v25  ;;  %1629 = vmatmul.f32.gmra.mxu3 %v2449_v49 }
 0x210   : > { %v1388_v23 = vpop.f32.mrf.mxu2  ;;  %v1776_v40 = vpop.f32.mrf.mxu0 }
 0x211   : > { %v1998_v13 = vadd.f32 %v1997_v39, %v1967_v1  ;;  %v1478_v0 = vadd.f32 %v1388_v23, %v1283_v31  ;;  %v2452_v23 = vld [vmem:[%s2883_s29 + $0x139] sm:$0xff] }
 0x212   : > { %v1196_v48 = vpop.f32.mrf.mxu1  ;;  %v1582_v34 = vpop.f32.mrf.mxu3 }
 0x213   : > { %v1672_v36 = vadd.f32 %v1582_v34, %v1478_v0  ;;  %1823 = vmatmul.f32.gmra.mxu0 %v2497_v4  ;;  %v1284_v51 = vadd.f32 %v1196_v48, %v3475_v63  ;;  %v2500_v34 = vld [vmem:[%s2883_s29 + $0x13a] sm:$0xff] }
 0x215   : > { %v1866_v8 = vadd.f32 %v1776_v40, %v1672_v36  ;;  %1243 = vmatmul.f32.gmra.mxu1 %v2496_v53  ;;  %1438 = vmatmul.f32.gmra.mxu2 %v2402_v9 }
 0x217   : > { %1898 = vst [vmem:[%s3689_s9 + $0x18] sm:$0xff] %v1866_v8  ;;  %v1929_v14 = vadd.f32 %v1928_v46, %v1866_v8  ;;  %v1968_v54 = vmul.f32 %v1866_v8, %v1866_v8  ;;  %1632 = vmatmul.f32.gmra.mxu3 %v2450_v6  ;;  %v2404_v46 = vld [vmem:[%s2883_s29 + $0x138] sm:$0xff] }
 0x218   : > { %v1391_v42 = vpop.f32.mrf.mxu2  ;;  %v1779_v22 = vpop.f32.mrf.mxu0 }
 0x219   : > { %v1999_v60 = vadd.f32 %v1998_v13, %v1968_v54  ;;  %v1479_v45 = vadd.f32 %v1391_v42, %v1284_v51  ;;  %v2405_v51 = vld [vmem:[%s2883_s29 + $0x140] sm:$0xff] }
 0x21a   : > { %v1199_v59 = vpop.f32.mrf.mxu1  ;;  %v1585_v44 = vpop.f32.mrf.mxu3  ;;  %v2453_v54 = vld [vmem:[%s2883_s29 + $0x141] sm:$0xff] }
 0x21b   : > { %v1673_v19 = vadd.f32 %v1585_v44, %v1479_v45  ;;  %1826 = vmatmul.f32.gmra.mxu0 %v2498_v27  ;;  %v1285_v63 = vadd.f32 %v1199_v59, %v3484_v10  ;;  %v2501_v59 = vld [vmem:[%s2883_s29 + $0x142] sm:$0xff] }
 0x21d   : > { %v1867_v53 = vadd.f32 %v1779_v22, %v1673_v19  ;;  %1246 = vmatmul.f32.gmra.mxu1 %v2497_v4  ;;  %1441 = vmatmul.f32.gmra.mxu2 %v2403_v37 }
 0x21f   : > { %1899 = vst [vmem:[%s3689_s9 + $0x20] sm:$0xff] %v1867_v53  ;;  %v1930_v39 = vadd.f32 %v1929_v14, %v1867_v53  ;;  %v1969_v29 = vmul.f32 %v1867_v53, %v1867_v53  ;;  %1635 = vmatmul.f32.gmra.mxu3 %v2451_v41  ;;  %v2406_v53 = vld [vmem:[%s2883_s29 + $0x150] sm:$0xff] }
 0x220   : > { %v1394_v52 = vpop.f32.mrf.mxu2  ;;  %v1782_v5 = vpop.f32.mrf.mxu0 }
 0x221   : > { %v2000_v56 = vadd.f32 %v1999_v60, %v1969_v29  ;;  %v1480_v49 = vadd.f32 %v1394_v52, %v1285_v63 }
 0x222   : > { %v1202_v25 = vpop.f32.mrf.mxu1  ;;  %v1588_v31 = vpop.f32.mrf.mxu3 }
 0x223   : > { %v1674_v1 = vadd.f32 %v1588_v31, %v1480_v49  ;;  %1829 = vmatmul.f32.gmra.mxu0 %v2499_v43  ;;  %v1286_v10 = vadd.f32 %v1202_v25, %v3499_v38  ;;  %v2502_v49 = vld [vmem:[%s2883_s29 + $0x152] sm:$0xff] }
 0x225   : > { %v1868_v40 = vadd.f32 %v1782_v5, %v1674_v1  ;;  %1249 = vmatmul.f32.gmra.mxu1 %v2498_v27  ;;  %1444 = vmatmul.f32.gmra.mxu2 %v2404_v46 }
 0x227   : > { %1900 = vst [vmem:[%s3689_s9 + $0x28] sm:$0xff] %v1868_v40  ;;  %v1931_v4 = vadd.f32 %v1930_v39, %v1868_v40  ;;  %v1970_v13 = vmul.f32 %v1868_v40, %v1868_v40  ;;  %1638 = vmatmul.f32.gmra.mxu3 %v2452_v23  ;;  %v2454_v39 = vld [vmem:[%s2883_s29 + $0x151] sm:$0xff] }
 0x228   : > { %v1397_v0 = vpop.f32.mrf.mxu2  ;;  %v1785_v48 = vpop.f32.mrf.mxu0  ;;  %v2407_v23 = vld [vmem:[%s2883_s29 + $0x158] sm:$0xff] }
 0x229   : > { %v2001_v9 = vadd.f32 %v2000_v56, %v1970_v13  ;;  %v1481_v36 = vadd.f32 %v1397_v0, %v1286_v10  ;;  %v2455_v10 = vld [vmem:[%s2883_s29 + $0x159] sm:$0xff] }
 0x22a   : > { %v1205_v6 = vpop.f32.mrf.mxu1  ;;  %v1591_v8 = vpop.f32.mrf.mxu3 }
 0x22b   : > { %v1675_v14 = vadd.f32 %v1591_v8, %v1481_v36  ;;  %1832 = vmatmul.f32.gmra.mxu0 %v2500_v34  ;;  %v1287_v38 = vadd.f32 %v1205_v6, %v3508_v17 }
 0x22d   : > { %v1869_v42 = vadd.f32 %v1785_v48, %v1675_v14  ;;  %1252 = vmatmul.f32.gmra.mxu1 %v2499_v43  ;;  %1447 = vmatmul.f32.gmra.mxu2 %v2405_v51  ;;  %v2408_v14 = vld [vmem:[%s2883_s29 + $0x168] sm:$0xff] }
 0x22f   : > { %1901 = vst [vmem:[%s3689_s9 + $0x30] sm:$0xff] %v1869_v42  ;;  %v1932_v22 = vadd.f32 %v1931_v4, %v1869_v42  ;;  %v1971_v27 = vmul.f32 %v1869_v42, %v1869_v42  ;;  %1641 = vmatmul.f32.gmra.mxu3 %v2453_v54  ;;  %v2456_v42 = vld [vmem:[%s2883_s29 + $0x169] sm:$0xff] }
 0x230   : > { %v1400_v60 = vpop.f32.mrf.mxu2  ;;  %v1788_v45 = vpop.f32.mrf.mxu0 }
 0x231   : > { %v2002_v44 = vadd.f32 %v2001_v9, %v1971_v27  ;;  %v1482_v37 = vadd.f32 %v1400_v60, %v1287_v38  ;;  %v2503_v9 = vld [vmem:[%s2883_s29 + $0x15a] sm:$0xff] }
 0x232   : > { %v1208_v19 = vpop.f32.mrf.mxu1  ;;  %v1594_v41 = vpop.f32.mrf.mxu3 }
 0x233   : > { %v1676_v63 = vadd.f32 %v1594_v41, %v1482_v37  ;;  %1835 = vmatmul.f32.gmra.mxu0 %v2501_v59  ;;  %v1288_v17 = vadd.f32 %v1208_v19, %v3523_v21 }
 0x235   : > { %v1870_v29 = vadd.f32 %v1788_v45, %v1676_v63  ;;  %1255 = vmatmul.f32.gmra.mxu1 %v2500_v34  ;;  %1450 = vmatmul.f32.gmra.mxu2 %v2406_v53  ;;  %v2409_v53 = vld [vmem:[%s2883_s29 + $0x170] sm:$0xff] }
 0x237   : > { %1902 = vst [vmem:[%s3689_s9 + $0x38] sm:$0xff] %v1870_v29  ;;  %v1933_v52 = vadd.f32 %v1932_v22, %v1870_v29  ;;  %v1972_v5 = vmul.f32 %v1870_v29, %v1870_v29  ;;  %1644 = vmatmul.f32.gmra.mxu3 %v2454_v39  ;;  %v2457_v39 = vld [vmem:[%s2883_s29 + $0x171] sm:$0xff] }
 0x238   : > { %v1403_v43 = vpop.f32.mrf.mxu2  ;;  %v1791_v56 = vpop.f32.mrf.mxu0 }
 0x239   : > { %v2003_v25 = vadd.f32 %v2002_v44, %v1972_v5  ;;  %v1483_v31 = vadd.f32 %v1403_v43, %v1288_v17 }
 0x23a   : > { %v1211_v46 = vpop.f32.mrf.mxu1  ;;  %v1597_v1 = vpop.f32.mrf.mxu3 }
 0x23b   : > { %v1677_v40 = vadd.f32 %v1597_v1, %v1483_v31  ;;  %1838 = vmatmul.f32.gmra.mxu0 %v2502_v49  ;;  %v1289_v21 = vadd.f32 %v1211_v46, %v3532_v57  ;;  %v2410_v1 = vld [vmem:[%s2883_s29 + $0x180] sm:$0xff] }
 0x23d   : > { %v1871_v4 = vadd.f32 %v1791_v56, %v1677_v40  ;;  %1258 = vmatmul.f32.gmra.mxu1 %v2501_v59  ;;  %1453 = vmatmul.f32.gmra.mxu2 %v2407_v23  ;;  %v2504_v59 = vld [vmem:[%s2883_s29 + $0x16a] sm:$0xff]  ;;  %v2505_v56 = vld [vmem:[%s2883_s29 + $0x172] sm:$0xff]  ;;  %v2458_v40 = vld [vmem:[%s2883_s29 + $0x181] sm:$0xff] }
 0x23f   : > { %1903 = vst [vmem:[%s3689_s9 + $0x40] sm:$0xff] %v1871_v4  ;;  %v1934_v13 = vadd.f32 %v1933_v52, %v1871_v4  ;;  %v1973_v0 = vmul.f32 %v1871_v4, %v1871_v4  ;;  %1647 = vmatmul.f32.gmra.mxu3 %v2455_v10 }
 0x240   : > { %v1406_v48 = vpop.f32.mrf.mxu2  ;;  %v1794_v34 = vpop.f32.mrf.mxu0 }
 0x241   : > { %v2004_v36 = vadd.f32 %v2003_v25, %v1973_v0  ;;  %v1484_v6 = vadd.f32 %v1406_v48, %v1289_v21  ;;  %v2506_v48 = vld [vmem:[%s2883_s29 + $0x182] sm:$0xff] }
 0x242   : > { %v1214_v8 = vpop.f32.mrf.mxu1  ;;  %v1600_v51 = vpop.f32.mrf.mxu3 }
 0x243   : > { %v1678_v54 = vadd.f32 %v1600_v51, %v1484_v6  ;;  %1841 = vmatmul.f32.gmra.mxu0 %v2503_v9  ;;  %v1290_v57 = vadd.f32 %v1214_v8, %v3547_v50  ;;  %v2411_v8 = vld [vmem:[%s2883_s29 + $0x188] sm:$0xff] }
 0x245   : > { %v1872_v38 = vadd.f32 %v1794_v34, %v1678_v54  ;;  %1261 = vmatmul.f32.gmra.mxu1 %v2502_v49  ;;  %1456 = vmatmul.f32.gmra.mxu2 %v2408_v14  ;;  %v2459_v14 = vld [vmem:[%s2883_s29 + $0x189] sm:$0xff] }
 0x247   : > { %1904 = vst [vmem:[%s3689_s9 + $0x48] sm:$0xff] %v1872_v38  ;;  %v1935_v22 = vadd.f32 %v1934_v13, %v1872_v38  ;;  %v1974_v27 = vmul.f32 %v1872_v38, %v1872_v38  ;;  %1650 = vmatmul.f32.gmra.mxu3 %v2456_v42 }
 0x248   : > { %v1409_v60 = vpop.f32.mrf.mxu2  ;;  %v1797_v45 = vpop.f32.mrf.mxu0 }
 0x249   : > { %v2005_v44 = vadd.f32 %v2004_v36, %v1974_v27  ;;  %v1485_v37 = vadd.f32 %v1409_v60, %v1290_v57  ;;  %v2507_v27 = vld [vmem:[%s2883_s29 + $0x18a] sm:$0xff] }
 0x24a   : > { %v1217_v19 = vpop.f32.mrf.mxu1  ;;  %v1603_v41 = vpop.f32.mrf.mxu3 }
 0x24b   : > { %v1679_v63 = vadd.f32 %v1603_v41, %v1485_v37  ;;  %1844 = vmatmul.f32.gmra.mxu0 %v2504_v59  ;;  %v1291_v50 = vadd.f32 %v1217_v19, %v3556_v7  ;;  %v2412_v37 = vld [vmem:[%s2883_s29 + $0x198] sm:$0xff] }
 0x24c   : > { %v2460_v41 = vld [vmem:[%s2883_s29 + $0x199] sm:$0xff] }
 0x24d   : > { %v1873_v29 = vadd.f32 %v1797_v45, %v1679_v63  ;;  %1264 = vmatmul.f32.gmra.mxu1 %v2503_v9  ;;  %1459 = vmatmul.f32.gmra.mxu2 %v2409_v53 }
 0x24f   : > { %1905 = vst [vmem:[%s3689_s9 + $0x50] sm:$0xff] %v1873_v29  ;;  %v1936_v17 = vadd.f32 %v1935_v22, %v1873_v29  ;;  %v1975_v52 = vmul.f32 %v1873_v29, %v1873_v29  ;;  %1653 = vmatmul.f32.gmra.mxu3 %v2457_v39 }
 0x250   : > { %v1412_v5 = vpop.f32.mrf.mxu2  ;;  %v1800_v43 = vpop.f32.mrf.mxu0 }
 0x251   : > { %v2006_v49 = vadd.f32 %v2005_v44, %v1975_v52  ;;  %v1486_v25 = vadd.f32 %v1412_v5, %v1291_v50 }
 0x252   : > { %v1220_v31 = vpop.f32.mrf.mxu1  ;;  %v1606_v46 = vpop.f32.mrf.mxu3 }
 0x253   : > { %v1680_v23 = vadd.f32 %v1606_v46, %v1486_v25  ;;  %1847 = vmatmul.f32.gmra.mxu0 %v2505_v56  ;;  %v1292_v7 = vadd.f32 %v1220_v31, %v3562_v30  ;;  %v2461_v31 = vld [vmem:[%s2883_s29 + $0x1a1] sm:$0xff] }
 0x255   : > { %v1874_v10 = vadd.f32 %v1800_v43, %v1680_v23  ;;  %1267 = vmatmul.f32.gmra.mxu1 %v2504_v59  ;;  %1462 = vmatmul.f32.gmra.mxu2 %v2410_v1 }
 0x257   : > { %1906 = vst [vmem:[%s3689_s9 + $0x58] sm:$0xff] %v1874_v10  ;;  %v1937_v4 = vadd.f32 %v1936_v17, %v1874_v10  ;;  %v1976_v21 = vmul.f32 %v1874_v10, %v1874_v10  ;;  %1656 = vmatmul.f32.gmra.mxu3 %v2458_v40  ;;  %v2508_v17 = vld [vmem:[%s2883_s29 + $0x19a] sm:$0xff] }
 0x258   : > { %v1415_v13 = vpop.f32.mrf.mxu2  ;;  %v1803_v0 = vpop.f32.mrf.mxu0 }
 0x259   : > { %v2007_v34 = vadd.f32 %v2006_v49, %v1976_v21  ;;  %v1487_v9 = vadd.f32 %v1415_v13, %v1292_v7  ;;  %v2413_v49 = vld [vmem:[%s2883_s29 + $0x1a0] sm:$0xff] }
 0x25a   : > { %v1223_v36 = vpop.f32.mrf.mxu1  ;;  %v1609_v6 = vpop.f32.mrf.mxu3  ;;  %v2509_v7 = vld [vmem:[%s2883_s29 + $0x1a2] sm:$0xff]  ;;  %s2531_s29 = sshll.u32 %s2804_s19, 8 }
 0x25b   : > { %v1681_v51 = vadd.f32 %v1609_v6, %v1487_v9  ;;  %1850 = vmatmul.f32.gmra.mxu0 %v2506_v48  ;;  %v1293_v30 = vadd.f32 %v1223_v36, %v3568_v11  ;;  %s2055_s12 = scalar_lea.hbm %s3882_s2, %s2531_s29 }
 0x25c   : > { %s2058_s14 = sshll.u32 %s2055_s12, 4  ;;  %s2059_s14 = int_to_ptr.hbm [resolvable:$true] %s2058_s14 }
 0x25d   : > { %v1875_v54 = vadd.f32 %v1803_v0, %v1681_v51  ;;  %1270 = vmatmul.f32.gmra.mxu1 %v2505_v56  ;;  %1465 = vmatmul.f32.gmra.mxu2 %v2411_v8  ;;  %s2646_s23 = sshra.s32 %s2059_s14, 4  ;;  %s2647_s23 = int_to_ptr.hbm [resolvable:$true] %s2646_s23 }
 0x25e   : > { %s2648_s27 = scalar_lea.hbm %s2647_s23, 256  ;;  %p2653_p0 = scmp.lt.s32.totalorder %s2647_s23, %s3882_s2 }
 0x25f   : > { %1907 = vst [vmem:[%s3689_s9 + $0x60] sm:$0xff] %v1875_v54  ;;  %v1938_v42 = vadd.f32 %v1937_v4, %v1875_v54  ;;  %v1977_v38 = vmul.f32 %v1875_v54, %v1875_v54  ;;  %1659 = vmatmul.f32.gmra.mxu3 %v2459_v14  ;;  %p2649_p11 = scmp.ne.s32.totalorder %s2647_s23, %s2648_s27  ;;  %p2654_p1 = scmp.lt.s32.totalorder %s2652_s5, %s2648_s27 }
 0x260   : > { %v1418_v57 = vpop.f32.mrf.mxu2  ;;  %v1806_v22 = vpop.f32.mrf.mxu0 }
 0x261   : > { %v2008_v60 = vadd.f32 %v2007_v34, %v1977_v38  ;;  %v1488_v45 = vadd.f32 %v1418_v57, %v1293_v30  ;;  %p2650_p12 = pnand %p2649_p11, %p2823_p5  ;;  %p2655_p2 = por %p2654_p1, %p2653_p0 }
 0x262   : > { %v1226_v59 = vpop.f32.mrf.mxu1  ;;  %v1612_v44 = vpop.f32.mrf.mxu3 }
 0x263   : > { %v1682_v19 = vadd.f32 %v1612_v44, %v1488_v45  ;;  %1853 = vmatmul.f32.gmra.mxu0 %v2507_v27  ;;  %v1294_v11 = vadd.f32 %v1226_v59, %v3574_v15  ;;  %p2651_p13 = pneg %p2650_p12 }
 0x265   : > { %v1876_v53 = vadd.f32 %v1806_v22, %v1682_v19  ;;  %1273 = vmatmul.f32.gmra.mxu1 %v2506_v48  ;;  %1468 = vmatmul.f32.gmra.mxu2 %v2412_v37  ;;  %p2656_p3 = pnand %p2655_p2, %p2651_p13 }
 0x267   : > { %1908 = vst [vmem:[%s3689_s9 + $0x68] sm:$0xff] %v1876_v53  ;;  %v1939_v63 = vadd.f32 %v1938_v42, %v1876_v53  ;;  %v1978_v39 = vmul.f32 %v1876_v53, %v1876_v53  ;;  %1662 = vmatmul.f32.gmra.mxu3 %v2460_v41 }
 0x268   : > { %v1421_v29 = vpop.f32.mrf.mxu2  ;;  %v1809_v50 = vpop.f32.mrf.mxu0 }
 0x269   : > { %v2009_v52 = vadd.f32 %v2008_v60, %v1978_v39  ;;  %v1489_v5 = vadd.f32 %v1421_v29, %v1294_v11 }
 0x26a   : > { %v1229_v43 = vpop.f32.mrf.mxu1  ;;  %v1615_v56 = vpop.f32.mrf.mxu3 }
 0x26b   : > { %v1683_v25 = vadd.f32 %v1615_v56, %v1489_v5  ;;  %1856 = vmatmul.f32.gmra.mxu0 %v2508_v17  ;;  %v1295_v15 = vadd.f32 %v1229_v43, %v3581_v61 }
 0x26d   : > { %v1877_v46 = vadd.f32 %v1809_v50, %v1683_v25  ;;  %1276 = vmatmul.f32.gmra.mxu1 %v2507_v27  ;;  %1471 = vmatmul.f32.gmra.mxu2 %v2413_v49 }
 0x26f   : > { %1909 = vst [vmem:[%s3689_s9 + $0x70] sm:$0xff] %v1877_v46  ;;  %v1940_v1 = vadd.f32 %v1939_v63, %v1877_v46  ;;  %v1979_v23 = vmul.f32 %v1877_v46, %v1877_v46  ;;  %1665 = vmatmul.f32.gmra.mxu3 %v2461_v31 }
 0x270   : > { %v1424_v40 = vpop.f32.mrf.mxu2  ;;  %v1812_v10 = vpop.f32.mrf.mxu0 }
 0x271   : > { %v2010_v4 = vadd.f32 %v2009_v52, %v1979_v23  ;;  %v1490_v21 = vadd.f32 %v1424_v40, %v1295_v15 }
 0x272   : > { %v1232_v13 = vpop.f32.mrf.mxu1  ;;  %v1618_v0 = vpop.f32.mrf.mxu3 }
 0x273   : > { %v1684_v48 = vadd.f32 %v1618_v0, %v1490_v21  ;;  %1859 = vmatmul.f32.gmra.mxu0 %v2509_v7  ;;  %v1296_v9 = vadd.f32 %v1232_v13, %v3588_v24 }
 0x275   : > { %v1878_v34 = vadd.f32 %v1812_v10, %v1684_v48 }
 0x277   : > { %1910 = vst [vmem:[%s3689_s9 + $0x78] sm:$0xff] %v1878_v34  ;;  %v1941_v61 = vadd.f32 %v1940_v1, %v1878_v34  ;;  %v1980_v36 = vmul.f32 %v1878_v34, %v1878_v34 }
 0x278   : > { %v1427_v6 = vpop.f32.mrf.mxu2  ;;  %v1815_v8 = vpop.f32.mrf.mxu0 }
 0x279   : > { %v2011_v51 = vadd.f32 %v2010_v4, %v1980_v36  ;;  %v1491_v14 = vadd.f32 %v1427_v6, %v1296_v9 }
 0x27a   : > { %v1235_v54 = vpop.f32.mrf.mxu1  ;;  %v1621_v30 = vpop.f32.mrf.mxu3 }
 0x27b   : > { %v1685_v42 = vadd.f32 %v1621_v30, %v1491_v14  ;;  %v1297_v57 = vadd.f32 %v1235_v54, %v3594_v33 }
 0x27d   : > { %v1879_v38 = vadd.f32 %v1815_v8, %v1685_v42 }
 0x27f   : > { %1911 = vst [vmem:[%s3689_s9 + $0x80] sm:$0xff] %v1879_v38  ;;  %v1942_v22 = vadd.f32 %v1941_v61, %v1879_v38  ;;  %v1981_v27 = vmul.f32 %v1879_v38, %v1879_v38 }
 0x280   : > { %v1430_v60 = vpop.f32.mrf.mxu2  ;;  %v1818_v45 = vpop.f32.mrf.mxu0 }
 0x281   : > { %v2012_v24 = vadd.f32 %v2011_v51, %v1981_v27  ;;  %v1492_v59 = vadd.f32 %v1430_v60, %v1297_v57 }
 0x282   : > { %v1238_v44 = vpop.f32.mrf.mxu1  ;;  %v1624_v37 = vpop.f32.mrf.mxu3 }
 0x283   : > { %v1686_v19 = vadd.f32 %v1624_v37, %v1492_v59  ;;  %v1298_v53 = vadd.f32 %v1238_v44, %v3600_v16 }
 0x285   : > { %v1880_v41 = vadd.f32 %v1818_v45, %v1686_v19 }
 0x287   : > { %1912 = vst [vmem:[%s3689_s9 + $0x88] sm:$0xff] %v1880_v41  ;;  %v1943_v11 = vadd.f32 %v1942_v22, %v1880_v41  ;;  %v1982_v63 = vmul.f32 %v1880_v41, %v1880_v41 }
 0x288   : > { %v1433_v39 = vpop.f32.mrf.mxu2  ;;  %v1821_v29 = vpop.f32.mrf.mxu0 }
 0x289   : > { %v2013_v33 = vadd.f32 %v2012_v24, %v1982_v63  ;;  %v1493_v50 = vadd.f32 %v1433_v39, %v1298_v53 }
 0x28a   : > { %v1241_v17 = vpop.f32.mrf.mxu1  ;;  %v1627_v52 = vpop.f32.mrf.mxu3 }
 0x28b   : > { %v1687_v5 = vadd.f32 %v1627_v52, %v1493_v50  ;;  %v1299_v56 = vadd.f32 %v1241_v17, %v3606_v62 }
 0x28d   : > { %v1881_v43 = vadd.f32 %v1821_v29, %v1687_v5 }
 0x28f   : > { %1913 = vst [vmem:[%s3689_s9 + $0x90] sm:$0xff] %v1881_v43  ;;  %v1944_v49 = vadd.f32 %v1943_v11, %v1881_v43  ;;  %v1983_v25 = vmul.f32 %v1881_v43, %v1881_v43 }
 0x290   : > { %v1436_v31 = vpop.f32.mrf.mxu2  ;;  %v1824_v46 = vpop.f32.mrf.mxu0 }
 0x291   : > { %v2014_v16 = vadd.f32 %v2013_v33, %v1983_v25  ;;  %v1494_v15 = vadd.f32 %v1436_v31, %v1299_v56 }
 0x292   : > { %v1244_v1 = vpop.f32.mrf.mxu1  ;;  %v1630_v23 = vpop.f32.mrf.mxu3 }
 0x293   : > { %v1688_v40 = vadd.f32 %v1630_v23, %v1494_v15  ;;  %v1300_v7 = vadd.f32 %v1244_v1, %v3612_v26 }
 0x295   : > { %v1882_v10 = vadd.f32 %v1824_v46, %v1688_v40 }
 0x297   : > { %1914 = vst [vmem:[%s3689_s9 + $0x98] sm:$0xff] %v1882_v10  ;;  %v1945_v4 = vadd.f32 %v1944_v49, %v1882_v10  ;;  %v1984_v21 = vmul.f32 %v1882_v10, %v1882_v10 }
 0x298   : > { %v1439_v13 = vpop.f32.mrf.mxu2  ;;  %v1827_v0 = vpop.f32.mrf.mxu0 }
 0x299   : > { %v2015_v62 = vadd.f32 %v2014_v16, %v1984_v21  ;;  %v1495_v48 = vadd.f32 %v1439_v13, %v1300_v7 }
 0x29a   : > { %v1247_v34 = vpop.f32.mrf.mxu1  ;;  %v1633_v9 = vpop.f32.mrf.mxu3 }
 0x29b   : > { %v1689_v61 = vadd.f32 %v1633_v9, %v1495_v48  ;;  %v1301_v6 = vadd.f32 %v1247_v34, %v3618_v47 }
 0x29d   : > { %v1883_v36 = vadd.f32 %v1827_v0, %v1689_v61 }
 0x29f   : > { %1915 = vst [vmem:[%s3689_s9 + $0xa0] sm:$0xff] %v1883_v36  ;;  %v1946_v8 = vadd.f32 %v1945_v4, %v1883_v36  ;;  %v1985_v51 = vmul.f32 %v1883_v36, %v1883_v36 }
 0x2a0   : > { %v1442_v14 = vpop.f32.mrf.mxu2  ;;  %v1830_v54 = vpop.f32.mrf.mxu0 }
 0x2a1   : > { %v2016_v26 = vadd.f32 %v2015_v62, %v1985_v51  ;;  %v1496_v30 = vadd.f32 %v1442_v14, %v1301_v6 }
 0x2a2   : > { %v1250_v42 = vpop.f32.mrf.mxu1  ;;  %v1636_v38 = vpop.f32.mrf.mxu3 }
 0x2a3   : > { %v1690_v57 = vadd.f32 %v1636_v38, %v1496_v30  ;;  %v1302_v27 = vadd.f32 %v1250_v42, %v3624_v55 }
 0x2a5   : > { %v1884_v22 = vadd.f32 %v1830_v54, %v1690_v57 }
 0x2a7   : > { %1916 = vst [vmem:[%s3689_s9 + $0xa8] sm:$0xff] %v1884_v22  ;;  %v1947_v60 = vadd.f32 %v1946_v8, %v1884_v22  ;;  %v1986_v45 = vmul.f32 %v1884_v22, %v1884_v22 }
 0x2a8   : > { %v1445_v24 = vpop.f32.mrf.mxu2  ;;  %v1833_v59 = vpop.f32.mrf.mxu0 }
 0x2a9   : > { %v2017_v47 = vadd.f32 %v2016_v26, %v1986_v45  ;;  %v1497_v44 = vadd.f32 %v1445_v24, %v1302_v27 }
 0x2aa   : > { %v1253_v37 = vpop.f32.mrf.mxu1  ;;  %v1639_v19 = vpop.f32.mrf.mxu3 }
 0x2ab   : > { %v1691_v41 = vadd.f32 %v1639_v19, %v1497_v44  ;;  %v1303_v11 = vadd.f32 %v1253_v37, %v3630_v20 }
 0x2ad   : > { %v1885_v53 = vadd.f32 %v1833_v59, %v1691_v41 }
 0x2af   : > { %1917 = vst [vmem:[%s3689_s9 + $0xb0] sm:$0xff] %v1885_v53  ;;  %v1948_v63 = vadd.f32 %v1947_v60, %v1885_v53  ;;  %v1987_v39 = vmul.f32 %v1885_v53, %v1885_v53 }
 0x2b0   : > { %v1448_v29 = vpop.f32.mrf.mxu2  ;;  %v1836_v33 = vpop.f32.mrf.mxu0 }
 0x2b1   : > { %v2018_v55 = vadd.f32 %v2017_v47, %v1987_v39  ;;  %v1498_v50 = vadd.f32 %v1448_v29, %v1303_v11 }
 0x2b2   : > { %v1256_v17 = vpop.f32.mrf.mxu1  ;;  %v1642_v52 = vpop.f32.mrf.mxu3 }
 0x2b3   : > { %v1692_v5 = vadd.f32 %v1642_v52, %v1498_v50  ;;  %v1304_v56 = vadd.f32 %v1256_v17, %v3636_v35 }
 0x2b5   : > { %v1886_v43 = vadd.f32 %v1836_v33, %v1692_v5 }
 0x2b7   : > { %1918 = vst [vmem:[%s3689_s9 + $0xb8] sm:$0xff] %v1886_v43  ;;  %v1949_v49 = vadd.f32 %v1948_v63, %v1886_v43  ;;  %v1988_v25 = vmul.f32 %v1886_v43, %v1886_v43 }
 0x2b8   : > { %v1451_v31 = vpop.f32.mrf.mxu2  ;;  %v1839_v46 = vpop.f32.mrf.mxu0 }
 0x2b9   : > { %v2019_v20 = vadd.f32 %v2018_v55, %v1988_v25  ;;  %v1499_v16 = vadd.f32 %v1451_v31, %v1304_v56 }
 0x2ba   : > { %v1259_v15 = vpop.f32.mrf.mxu1  ;;  %v1645_v1 = vpop.f32.mrf.mxu3 }
 0x2bb   : > { %v1693_v23 = vadd.f32 %v1645_v1, %v1499_v16  ;;  %v1305_v10 = vadd.f32 %v1259_v15, %v3642_v3 }
 0x2bd   : > { %v1887_v40 = vadd.f32 %v1839_v46, %v1693_v23 }
 0x2bf   : > { %1919 = vst [vmem:[%s3689_s9 + $0xc0] sm:$0xff] %v1887_v40  ;;  %v1950_v7 = vadd.f32 %v1949_v49, %v1887_v40  ;;  %v1989_v4 = vmul.f32 %v1887_v40, %v1887_v40 }
 0x2c0   : > { %v1454_v21 = vpop.f32.mrf.mxu2  ;;  %v1842_v13 = vpop.f32.mrf.mxu0 }
 0x2c1   : > { %v2020_v35 = vadd.f32 %v2019_v20, %v1989_v4  ;;  %v1500_v0 = vadd.f32 %v1454_v21, %v1305_v10 }
 0x2c2   : > { %v1262_v62 = vpop.f32.mrf.mxu1  ;;  %v1648_v48 = vpop.f32.mrf.mxu3 }
 0x2c3   : > { %v1694_v34 = vadd.f32 %v1648_v48, %v1500_v0  ;;  %v1306_v61 = vadd.f32 %v1262_v62, %v3648_v32 }
 0x2c5   : > { %v1888_v9 = vadd.f32 %v1842_v13, %v1694_v34 }
 0x2c7   : > { %1920 = vst [vmem:[%s3689_s9 + $0xc8] sm:$0xff] %v1888_v9  ;;  %v1951_v36 = vadd.f32 %v1950_v7, %v1888_v9  ;;  %v1990_v6 = vmul.f32 %v1888_v9, %v1888_v9 }
 0x2c8   : > { %v1457_v8 = vpop.f32.mrf.mxu2  ;;  %v1845_v51 = vpop.f32.mrf.mxu0 }
 0x2c9   : > { %v2021_v3 = vadd.f32 %v2020_v35, %v1990_v6  ;;  %v1501_v14 = vadd.f32 %v1457_v8, %v1306_v61 }
 0x2ca   : > { %v1265_v54 = vpop.f32.mrf.mxu1  ;;  %v1651_v26 = vpop.f32.mrf.mxu3 }
 0x2cb   : > { %v1695_v30 = vadd.f32 %v1651_v26, %v1501_v14  ;;  %v1307_v38 = vadd.f32 %v1265_v54, %v3654_v58 }
 0x2cd   : > { %v1889_v42 = vadd.f32 %v1845_v51, %v1695_v30 }
 0x2cf   : > { %1921 = vst [vmem:[%s3689_s9 + $0xd0] sm:$0xff] %v1889_v42  ;;  %v1952_v57 = vadd.f32 %v1951_v36, %v1889_v42  ;;  %v1991_v22 = vmul.f32 %v1889_v42, %v1889_v42 }
 0x2d0   : > { %v1460_v27 = vpop.f32.mrf.mxu2  ;;  %v1848_v60 = vpop.f32.mrf.mxu0 }
 0x2d1   : > { %v2022_v32 = vadd.f32 %v2021_v3, %v1991_v22  ;;  %v1502_v45 = vadd.f32 %v1460_v27, %v1307_v38 }
 0x2d2   : > { %v1268_v24 = vpop.f32.mrf.mxu1  ;;  %v1654_v59 = vpop.f32.mrf.mxu3 }
 0x2d3   : > { %v1696_v47 = vadd.f32 %v1654_v59, %v1502_v45  ;;  %v1308_v37 = vadd.f32 %v1268_v24, %v3660_v2 }
 0x2d5   : > { %v1890_v44 = vadd.f32 %v1848_v60, %v1696_v47 }
 0x2d7   : > { %1922 = vst [vmem:[%s3689_s9 + $0xd8] sm:$0xff] %v1890_v44  ;;  %v1953_v19 = vadd.f32 %v1952_v57, %v1890_v44  ;;  %v1992_v41 = vmul.f32 %v1890_v44, %v1890_v44 }
 0x2d8   : > { %v1463_v53 = vpop.f32.mrf.mxu2  ;;  %v1851_v11 = vpop.f32.mrf.mxu0 }
 0x2d9   : > { %v2023_v58 = vadd.f32 %v2022_v32, %v1992_v41  ;;  %v1503_v63 = vadd.f32 %v1463_v53, %v1308_v37 }
 0x2da   : > { %v1271_v39 = vpop.f32.mrf.mxu1  ;;  %v1657_v29 = vpop.f32.mrf.mxu3 }
 0x2db   : > { %v1697_v33 = vadd.f32 %v1657_v29, %v1503_v63  ;;  %v1309_v50 = vadd.f32 %v1271_v39, %v3666_v12 }
 0x2dd   : > { %v1891_v55 = vadd.f32 %v1851_v11, %v1697_v33 }
 0x2df   : > { %1923 = vst [vmem:[%s3689_s9 + $0xe0] sm:$0xff] %v1891_v55  ;;  %v1954_v17 = vadd.f32 %v1953_v19, %v1891_v55  ;;  %v1993_v52 = vmul.f32 %v1891_v55, %v1891_v55 }
 0x2e0   : > { %v1466_v5 = vpop.f32.mrf.mxu2  ;;  %v1854_v43 = vpop.f32.mrf.mxu0 }
 0x2e1   : > { %v2024_v2 = vadd.f32 %v2023_v58, %v1993_v52  ;;  %v1504_v56 = vadd.f32 %v1466_v5, %v1309_v50 }
 0x2e2   : > { %v1274_v49 = vpop.f32.mrf.mxu1  ;;  %v1660_v25 = vpop.f32.mrf.mxu3 }
 0x2e3   : > { %v1698_v31 = vadd.f32 %v1660_v25, %v1504_v56  ;;  %v1310_v20 = vadd.f32 %v1274_v49, %v3672_v28 }
 0x2e5   : > { %v1892_v46 = vadd.f32 %v1854_v43, %v1698_v31 }
 0x2e7   : > { %1924 = vst [vmem:[%s3689_s9 + $0xe8] sm:$0xff] %v1892_v46  ;;  %v1955_v16 = vadd.f32 %v1954_v17, %v1892_v46  ;;  %v1994_v15 = vmul.f32 %v1892_v46, %v1892_v46 }
 0x2e8   : > { %v1469_v1 = vpop.f32.mrf.mxu2  ;;  %v1857_v12 = vpop.f32.mrf.mxu0 }
 0x2e9   : > { %v2025_v23 = vadd.f32 %v2024_v2, %v1994_v15  ;;  %v1505_v40 = vadd.f32 %v1469_v1, %v1310_v20 }
 0x2ea   : > { %v1663_v10 = vpop.f32.mrf.mxu3  ;;  %v1277_v4 = vpop.f32.mrf.mxu1 }
 0x2eb   : > { %v1699_v7 = vadd.f32 %v1663_v10, %v1505_v40  ;;  %v1311_v28 = vadd.f32 %v1277_v4, %v3678_v18 }
 0x2ed   : > { %v1893_v21 = vadd.f32 %v1857_v12, %v1699_v7 }
 0x2ef   : > { %1925 = vst [vmem:[%s3689_s9 + $0xf0] sm:$0xff] %v1893_v21  ;;  %v1956_v13 = vadd.f32 %v1955_v16, %v1893_v21  ;;  %v1995_v35 = vmul.f32 %v1893_v21, %v1893_v21 }
 0x2f0   : > { %v1472_v0 = vpop.f32.mrf.mxu2  ;;  %v1860_v9 = vpop.f32.mrf.mxu0 }
 0x2f1   : > { %v2026_v62 = vadd.f32 %v2025_v23, %v1995_v35  ;;  %v1506_v48 = vadd.f32 %v1472_v0, %v1311_v28 }
 0x2f2   : > { %v1666_v34 = vpop.f32.mrf.mxu3 }
 0x2f3   : > { %v1700_v61 = vadd.f32 %v1666_v34, %v1506_v48 }
 0x2f5   : > { %v1894_v36 = vadd.f32 %v1860_v9, %v1700_v61 }
 0x2f7   : > { %1926 = vst [vmem:[%s3689_s9 + $0xf8] sm:$0xff] %v1894_v36  ;;  %v1957_v6 = vadd.f32 %v1956_v13, %v1894_v36  ;;  %v1996_v8 = vmul.f32 %v1894_v36, %v1894_v36 }
 0x2f8   : > { %2659 = shalt.err (!%p2656_p3)
}
 0x2f9   : > { %s2756_s9 = smov 128   ;;  %s2757_s29 = smov 8   ;;  %v1958_v18 = vrot.slane %v1957_v6, 4  ;;  %v2027_v51 = vadd.f32 %v2026_v62, %v1996_v8 }
 0x2fa   : > { %2581 = dma.vmem_to_hbm [thread:$0]  (%p2823_p5), %s2057_s13, 4096, %s2059_s14, %s2036_s22, %s2756_s9, %s2756_s9, %s2757_s29  }
 0x2fb   : > { %v1959_v3 = vadd.f32 %v1958_v18, %v1957_v6  ;;  %v2028_v14 = vrot.slane %v2027_v51, 4  ;;  %s2070_s12 = scalar_lea.hbm %s3883_s3, %s2804_s19  ;;  %s2040_s23 = sand.u32 1, %s2804_s19  }
 0x2fc   : > { %s2083_s30 = scalar_lea.hbm %s3884_s4, %s2804_s19  ;;  %s200_s5 = scalar_lea.vmem [#allocation4], %s3681_s7 }
 0x2fd   : > { %v1960_v54 = vrot.slane %v1959_v3, 2  ;;  %v2029_v26 = vadd.f32 %v2028_v14, %v2027_v51  ;;  %s3822_s13 = sshll.u32 %s200_s5, 4  ;;  %s3824_s14 = sshll.u32 %s2070_s12, 4  ;;  %s2073_s13 = int_to_ptr.vmem [resolvable:$true] %s3822_s13  ;;  %s2075_s14 = int_to_ptr.hbm [resolvable:$true] %s3824_s14 }
 0x2fe   : > { %s206_s22 = scalar_lea.vmem [#allocation6], %s3681_s7  ;;  %s3829_s8 = sshll.u32 %s2083_s30, 4  ;;  %s2088_s8 = int_to_ptr.hbm [resolvable:$true] %s3829_s8 }
 0x2ff   : > { %v2030_v30 = vrot.slane %v2029_v26, 2  ;;  %v1961_v42 = vadd.f32 %v1960_v54, %v1959_v3  ;;  %s3827_s6 = sshll.u32 %s206_s22, 4  ;;  %s2041_s19 = scalar_lea.sflag [#allocation5], %s2040_s23  ;;  %s2086_s6 = int_to_ptr.vmem [resolvable:$true] %s3827_s6 }
 0x300   : > { %s2674_s9 = sshra.s32 %s2075_s14, 4  ;;  %s2680_s11 = scalar_lea.hbm %s3883_s3, 2  ;;  %s2675_s9 = int_to_ptr.hbm [resolvable:$true] %s2674_s9 }
 0x301   : > { %v1962_v38 = vrot.slane %v1961_v42, 1  ;;  %v2031_v57 = vadd.f32 %v2030_v30, %v2029_v26  ;;  %s2676_s29 = scalar_lea.hbm %s2675_s9, 1  ;;  %p2681_p9 = scmp.lt.s32.totalorder %s2675_s9, %s3883_s3 }
 0x302   : > { %p2677_p4 = scmp.ne.s32.totalorder %s2675_s9, %s2676_s29  ;;  %p2682_p10 = scmp.lt.s32.totalorder %s2680_s11, %s2676_s29 }
 0x303   : > { %v1963_v22 = vadd.f32 %v1962_v38, %v1961_v42  ;;  %v2032_v27 = vrot.slane %v2031_v57, 1 }
 0x304   : > { %p2678_p7 = pnand %p2677_p4, %p2823_p5  ;;  %p2683_p11 = por %p2682_p10, %p2681_p9 }
 0x305   : > { %1964 = vst [vmem:[%s200_s5] sm:$0x1] %v1963_v22  ;;  %v2033_v60 = vadd.f32 %v2032_v27, %v2031_v57 }
 0x306   : > { %p2679_p8 = pneg %p2678_p7 }
 0x308   : > { %p2684_p12 = pnand %p2683_p11, %p2679_p8 }
 0x30a   : > { %2687 = shalt.err (!%p2684_p12)
}
 0x30b   : > { %2582 = dma.vmem_to_hbm [thread:$0]  (%p2823_p5), %s2073_s13, 16, %s2075_s14, %s2041_s19   ;;  %2034 = vst [vmem:[%s206_s22] sm:$0x1] %v2033_v60 }
 0x30c   : > { %s2702_s23 = sshra.s32 %s2088_s8, 4  ;;  %s2708_s9 = scalar_lea.hbm %s3884_s4, 2  ;;  %s2703_s23 = int_to_ptr.hbm [resolvable:$true] %s2702_s23 }
 0x30d   : > { %s2704_s28 = scalar_lea.hbm %s2703_s23, 1  ;;  %p2709_p2 = scmp.lt.s32.totalorder %s2703_s23, %s3884_s4 }
 0x30e   : > { %p2705_p13 = scmp.ne.s32.totalorder %s2703_s23, %s2704_s28  ;;  %p2710_p3 = scmp.lt.s32.totalorder %s2708_s9, %s2704_s28 }
 0x310   : > { %p2706_p0 = pnand %p2705_p13, %p2823_p5  ;;  %p2711_p4 = por %p2710_p3, %p2709_p2 }
 0x312   : > { %p2707_p1 = pneg %p2706_p0 }
 0x314   : > { %p2712_p7 = pnand %p2711_p4, %p2707_p1 }
 0x316   : > { %2715 = shalt.err (!%p2712_p7)
}
 0x317   : > { %2583 = dma.vmem_to_hbm [thread:$0]  (%p2823_p5), %s2086_s6, 16, %s2088_s8, %s2041_s19  }
 0x318 PF: > { %p2597_p8 = scmp.ge.s32.totalorder %s2754_s18, 2  ;;  %s2099_s13 = sand.u32 1, %s2742_s15  }
 0x319   : > { %s2100_s14 = scalar_lea.sflag [#allocation3], %s2099_s13 }
 0x31a   : > { %p2588_p9 = pnand %p2597_p8, %p2827_p6 }
 0x31c   : > { %p2589_p10 = pneg %p2588_p9 }
 0x31e   : > { %2733 = dma.done.wait (%p2589_p10), %s2100_s14, 4096  }
 0x31f   : > { %2735 = vsyncadd (%p2589_p10), %s2100_s14, 4294963200  ;;  %s2109_s25 = sand.u32 1, %s2200_s20  }
 0x320   : > { %s2110_s22 = scalar_lea.sflag [#allocation5], %s2109_s25 }
 0x321   : > { %2737 = dma.done.wait (%p2589_p10), %s2110_s22, 32  }
 0x322   : > { %2739 = vsyncadd (%p2589_p10), %s2110_s22, 4294967264  ;;  %p18_p5 = scmp.ge.s32.totalorder %s2808_s21, 4   ;;  %s3887_s15 = smov %s2746_s16 }
 0x323   : > { %s3888_s16 = smov %s2750_s17  ;;  %s3889_s17 = smov %s2821_s24 }
 0x324   : > { %s3890_s18 = smov %s2808_s21  ;;  %20 = sbr.rel (!%p18_p5) target bundleno = 5 (0x5), region = 105 }
 0x329   :  { %2124 = vsyncpa [#allocation3], 1 }
 0x32a   :  { %2126 = vsyncpa [#allocation3 + $0x1], 1 }
 0x32b   :  { %2127 = vsyncpa [#allocation5], 1 }
 0x32c   :  { %2129 = vsyncpa [#allocation5 + $0x1], 1 }

</bundles_post_ra>
